<compile_context>
chip_gen: v6e
topology: v6e:2x2x1
jax: 0.10.0
libtpu: 0.0.40
codegen_flags: <defaults>
</compile_context>

<pallas_src>
import jax
import jax.numpy as jnp
from jax.experimental import pallas as pl
from jax.experimental.pallas import tpu as pltpu


def _leaky_relu(x, slope=0.01):
    return jnp.where(x > 0, x, slope * x)


def deform_decoder_kernel(gf_ref, lf_ref, w1_ref, b1_ref, w2_ref, b2_ref,
                          w3_ref, b3_ref, o_ref, h2_ref):
    # ---- Layers 1-2: computed once (tile 0) into VMEM scratch, reused across
    # the layer-3 output-tile grid axis.
    @pl.when(pl.program_id(0) == 0)
    def _():
        dg = gf_ref.shape[1]
        gf = gf_ref[...].astype(jnp.bfloat16)
        lf = lf_ref[...].astype(jnp.bfloat16)
        w1 = w1_ref[...]                      # (F, 1024) bf16
        # concat-free layer 1: [g|l] @ W1 == g @ W1[:Dg] + l @ W1[Dg:]
        h = (jnp.dot(gf, w1[:dg, :], preferred_element_type=jnp.float32)
             + jnp.dot(lf, w1[dg:, :], preferred_element_type=jnp.float32)
             + b1_ref[...])
        h = _leaky_relu(h)
        h = jnp.dot(h.astype(jnp.bfloat16), w2_ref[...],
                    preferred_element_type=jnp.float32) + b2_ref[...]
        h2_ref[...] = _leaky_relu(h)          # (B, 512) f32 scratch

    # ---- Layer 3 tile: (B,512) @ (512,TN) + b3 -> Tanh -> *0.1
    h3 = jnp.dot(h2_ref[...].astype(jnp.bfloat16), w3_ref[...],
                 preferred_element_type=jnp.float32) + b3_ref[...]
    o_ref[...] = jnp.tanh(h3) * 0.1


def deform_decoder_forward(global_features, local_features, params, vertex_num,
                           tn=1024):
    w1, b1, w2, b2, w3, b3 = params
    B, dg = global_features.shape
    _, dl = local_features.shape
    feat = dg + dl
    out_dim = vertex_num * 3

    # Layer-3 output tile: full dim if small, else a multiple of 128 (lane tile).
    if out_dim <= tn:
        tn = out_dim
    else:
        tn = max(128, (tn // 128) * 128)
    grid = (pl.cdiv(out_dim, tn),)

    flops = 2 * B * (feat * 1024 + 1024 * 512 + 512 * out_dim)
    bytes_accessed = (
        (w1.size + w2.size + w3.size) * 2          # bf16 weights
        + (b1.size + b2.size + b3.size) * 4        # f32 biases
        + (B * feat + B * out_dim) * 4)            # f32 activations in/out
    cost = pl.CostEstimate(flops=flops,
                           transcendentals=B * out_dim,   # tanh
                           bytes_accessed=bytes_accessed)

    const = lambda j: (0, 0)   # resident blocks: fetched once, revisited over j

    out = pl.pallas_call(
        deform_decoder_kernel,
        out_shape=jax.ShapeDtypeStruct((B, out_dim), jnp.float32),
        grid_spec=pltpu.PrefetchScalarGridSpec(
            num_scalar_prefetch=0,
            grid=grid,
            in_specs=[
                pl.BlockSpec((B, dg), const),          # global features
                pl.BlockSpec((B, dl), const),          # local features
                pl.BlockSpec((feat, 1024), const),     # w1 (bf16)
                pl.BlockSpec((1, 1024), const),        # b1
                pl.BlockSpec((1024, 512), const),      # w2 (bf16)
                pl.BlockSpec((1, 512), const),         # b2
                pl.BlockSpec((512, tn), lambda j: (0, j)),  # w3 tile (bf16)
                pl.BlockSpec((1, tn), lambda j: (0, j)),    # b3 tile
            ],
            out_specs=pl.BlockSpec((B, tn), lambda j: (0, j)),
            scratch_shapes=[pltpu.VMEM((B, 512), jnp.float32)],  # h2
        ),
        compiler_params=pltpu.CompilerParams(
            # scratch h2 is carried across the layer-3 tile axis -> "arbitrary"
            dimension_semantics=("arbitrary",),
            vmem_limit_bytes=64 * 1024 * 1024,
        ),
        cost_estimate=cost,
    )(global_features, local_features, w1, b1, w2, b2, w3, b3)

    # JAX glue: view(-1, V, 3); keep the kernel output lane-dense (B, 3V).
    return out.reshape(-1, vertex_num, 3)


def init_params(key, feature_dim, vertex_num):
    # PyTorch-Linear-style init U(-1/sqrt(fan_in), 1/sqrt(fan_in));
    # weights stored (in, out) and cast to bf16 for the DMA-bound kernel.
    dims = [(feature_dim, 1024), (1024, 512), (512, vertex_num * 3)]
    params = []
    for fan_in, fan_out in dims:
        key, kw, kb = jax.random.split(key, 3)
        bound = 1.0 / (fan_in ** 0.5)
        w = jax.random.uniform(kw, (fan_in, fan_out), jnp.float32,
                               minval=-bound, maxval=bound)
        b = jax.random.uniform(kb, (1, fan_out), jnp.float32,
                               minval=-bound, maxval=bound)
        params += [w.astype(jnp.bfloat16), b]
    return tuple(params)


def reference_forward(global_features, local_features, params, vertex_num):
    # Pure-JAX reference mimicking the kernel's bf16 rounding of weights and
    # pre-matmul activations (accumulation in f32), so the comparison is tight.
    w1, b1, w2, b2, w3, b3 = params
    dg = global_features.shape[1]

    def r(a):  # round activations to bf16, compute in f32
        return a.astype(jnp.bfloat16).astype(jnp.float32)

    w1f, w2f, w3f = (w.astype(jnp.float32) for w in (w1, w2, w3))
    h = (r(global_features) @ w1f[:dg, :]
         + r(local_features) @ w1f[dg:, :] + b1)
    h = _leaky_relu(h)
    h = _leaky_relu(r(h) @ w2f + b2)
    h = jnp.tanh(r(h) @ w3f + b3) * 0.1
    return h.reshape(-1, vertex_num, 3)


if __name__ == "__main__":
    key = jax.random.PRNGKey(0)

    batch = 2
    global_dim = 16
    local_dim = 16
    feature_dim = global_dim + local_dim
    vertex_num = 128          # 3*V = 384, a multiple of 128 -> lane-dense stores

    k1, k2, k3 = jax.random.split(key, 3)
    global_features = jax.random.normal(k1, (batch, global_dim), jnp.float32)
    local_features = jax.random.normal(k2, (batch, local_dim), jnp.float32)
    params = init_params(k3, feature_dim, vertex_num)

    deform = deform_decoder_forward(global_features, local_features,
                                    params, vertex_num)
    deform = jax.block_until_ready(deform)

    ref = reference_forward(global_features, local_features, params, vertex_num)
    assert deform.shape == (batch, vertex_num, 3)
    # bf16 weights + bf16-rounded activations -> relax tolerance vs pure f32.
    assert jnp.allclose(deform, ref, atol=1e-3, rtol=1e-2), (
        float(jnp.max(jnp.abs(deform - ref))))

    print("KERNEL_OK")
</pallas_src>

<mosaic_0001>
module attributes {stable_mosaic.version = 11 : i64} {
  func.func @deform_decoder_kernel(%arg0: i32, %arg1: memref<2x16xf32, #tpu.memory_space<vmem>>, %arg2: memref<2x16xf32, #tpu.memory_space<vmem>>, %arg3: memref<32x1024xbf16, #tpu.memory_space<vmem>>, %arg4: memref<1x1024xf32, #tpu.memory_space<vmem>>, %arg5: memref<1024x512xbf16, #tpu.memory_space<vmem>>, %arg6: memref<1x512xf32, #tpu.memory_space<vmem>>, %arg7: memref<512x384xbf16, #tpu.memory_space<vmem>>, %arg8: memref<1x384xf32, #tpu.memory_space<vmem>>, %arg9: memref<2x384xf32, #tpu.memory_space<vmem>>, %arg10: memref<2x512xf32, #tpu.memory_space<vmem>>) attributes {dimension_semantics = [#tpu.dimension_semantics<arbitrary>], iteration_bounds = array<i64: 1>, scalar_prefetch = 0 : i64, scratch_operands = 1 : i64, tpu.core_type = #tpu.core_type<tc>, window_params = [{pipeline_mode = #tpu.pipeline_mode<synchronous>, transform_indices = @transform_0, window_bounds = array<i64: 2, 16>}, {pipeline_mode = #tpu.pipeline_mode<synchronous>, transform_indices = @transform_1, window_bounds = array<i64: 2, 16>}, {pipeline_mode = #tpu.pipeline_mode<synchronous>, transform_indices = @transform_2, window_bounds = array<i64: 32, 1024>}, {pipeline_mode = #tpu.pipeline_mode<synchronous>, transform_indices = @transform_3, window_bounds = array<i64: 1, 1024>}, {pipeline_mode = #tpu.pipeline_mode<synchronous>, transform_indices = @transform_4, window_bounds = array<i64: 1024, 512>}, {pipeline_mode = #tpu.pipeline_mode<synchronous>, transform_indices = @transform_5, window_bounds = array<i64: 1, 512>}, {transform_indices = @transform_6, window_bounds = array<i64: 512, 384>}, {transform_indices = @transform_7, window_bounds = array<i64: 1, 384>}, {transform_indices = @transform_8, window_bounds = array<i64: 2, 384>}]} {
    %c0_i32 = arith.constant 0 : i32
    %0 = arith.cmpi eq, %arg0, %c0_i32 : i32
    %1 = arith.extui %0 : i1 to i32
    %c0_i32_0 = arith.constant 0 : i32
    %2 = arith.cmpi ne, %1, %c0_i32_0 : i32
    scf.if %2 {
      %c0_9 = arith.constant 0 : index
      %c0_10 = arith.constant 0 : index
      %14 = vector.load %arg1[%c0_9, %c0_10] : memref<2x16xf32, #tpu.memory_space<vmem>>, vector<2x16xf32>
      %15 = arith.truncf %14 : vector<2x16xf32> to vector<2x16xbf16>
      %c0_11 = arith.constant 0 : index
      %c0_12 = arith.constant 0 : index
      %16 = vector.load %arg2[%c0_11, %c0_12] : memref<2x16xf32, #tpu.memory_space<vmem>>, vector<2x16xf32>
      %17 = arith.truncf %16 : vector<2x16xf32> to vector<2x16xbf16>
      %c0_13 = arith.constant 0 : index
      %c0_14 = arith.constant 0 : index
      %18 = vector.load %arg3[%c0_13, %c0_14] : memref<32x1024xbf16, #tpu.memory_space<vmem>>, vector<32x1024xbf16>
      %19 = vector.extract_strided_slice %18 {offsets = [0, 0], sizes = [16, 1024], strides = [1, 1]} : vector<32x1024xbf16> to vector<16x1024xbf16>
      %cst_15 = arith.constant dense<0.000000e+00> : vector<2x1024xf32>
      %20 = tpu.matmul %15, %19, %cst_15 {dimension_numbers = #tpu.dot_dimension_numbers<[1], [0], [0], [1], [0, 0, 1, 1], [], []>} : vector<2x16xbf16>, vector<16x1024xbf16>, vector<2x1024xf32> -> vector<2x1024xf32>
      %21 = vector.extract_strided_slice %18 {offsets = [16, 0], sizes = [16, 1024], strides = [1, 1]} : vector<32x1024xbf16> to vector<16x1024xbf16>
      %cst_16 = arith.constant dense<0.000000e+00> : vector<2x1024xf32>
      %22 = tpu.matmul %17, %21, %cst_16 {dimension_numbers = #tpu.dot_dimension_numbers<[1], [0], [0], [1], [0, 0, 1, 1], [], []>} : vector<2x16xbf16>, vector<16x1024xbf16>, vector<2x1024xf32> -> vector<2x1024xf32>
      %23 = arith.addf %20, %22 : vector<2x1024xf32>
      %c0_17 = arith.constant 0 : index
      %c0_18 = arith.constant 0 : index
      %24 = vector.load %arg4[%c0_17, %c0_18] : memref<1x1024xf32, #tpu.memory_space<vmem>>, vector<1x1024xf32>
      %25 = vector.broadcast %24 : vector<1x1024xf32> to vector<2x1024xf32>
      %26 = arith.addf %23, %25 : vector<2x1024xf32>
      %cst_19 = arith.constant 0.000000e+00 : f32
      %27 = vector.broadcast %cst_19 : f32 to vector<2x1024xf32>
      %28 = arith.cmpf ogt, %26, %27 : vector<2x1024xf32>
      %cst_20 = arith.constant 0.00999999977 : f32
      %29 = vector.broadcast %cst_20 : f32 to vector<2x1024xf32>
      %30 = arith.mulf %29, %26 : vector<2x1024xf32>
      %31 = arith.select %28, %26, %30 : vector<2x1024xi1>, vector<2x1024xf32>
      %32 = arith.truncf %31 : vector<2x1024xf32> to vector<2x1024xbf16>
      %c0_21 = arith.constant 0 : index
      %c0_22 = arith.constant 0 : index
      %33 = vector.load %arg5[%c0_21, %c0_22] : memref<1024x512xbf16, #tpu.memory_space<vmem>>, vector<1024x512xbf16>
      %cst_23 = arith.constant dense<0.000000e+00> : vector<2x512xf32>
      %34 = tpu.matmul %32, %33, %cst_23 {dimension_numbers = #tpu.dot_dimension_numbers<[1], [0], [0], [1], [0, 0, 1, 1], [], []>} : vector<2x1024xbf16>, vector<1024x512xbf16>, vector<2x512xf32> -> vector<2x512xf32>
      %c0_24 = arith.constant 0 : index
      %c0_25 = arith.constant 0 : index
      %35 = vector.load %arg6[%c0_24, %c0_25] : memref<1x512xf32, #tpu.memory_space<vmem>>, vector<1x512xf32>
      %36 = vector.broadcast %35 : vector<1x512xf32> to vector<2x512xf32>
      %37 = arith.addf %34, %36 : vector<2x512xf32>
      %cst_26 = arith.constant 0.000000e+00 : f32
      %38 = vector.broadcast %cst_26 : f32 to vector<2x512xf32>
      %39 = arith.cmpf ogt, %37, %38 : vector<2x512xf32>
      %cst_27 = arith.constant 0.00999999977 : f32
      %40 = vector.broadcast %cst_27 : f32 to vector<2x512xf32>
      %41 = arith.mulf %40, %37 : vector<2x512xf32>
      %42 = arith.select %39, %37, %41 : vector<2x512xi1>, vector<2x512xf32>
      %c0_28 = arith.constant 0 : index
      %c0_29 = arith.constant 0 : index
      %43 = vector.load %arg10[%c0_28, %c0_29] : memref<2x512xf32, #tpu.memory_space<vmem>>, vector<2x512xf32>
      tpu.vector_store %arg10[%c0_28, %c0_29], %42 {strides = array<i32>} : memref<2x512xf32, #tpu.memory_space<vmem>>, vector<2x512xf32>,
    } else {
    }
    %c0 = arith.constant 0 : index
    %c0_1 = arith.constant 0 : index
    %3 = vector.load %arg10[%c0, %c0_1] : memref<2x512xf32, #tpu.memory_space<vmem>>, vector<2x512xf32>
    %4 = arith.truncf %3 : vector<2x512xf32> to vector<2x512xbf16>
    %c0_2 = arith.constant 0 : index
    %c0_3 = arith.constant 0 : index
    %5 = vector.load %arg7[%c0_2, %c0_3] : memref<512x384xbf16, #tpu.memory_space<vmem>>, vector<512x384xbf16>
    %cst = arith.constant dense<0.000000e+00> : vector<2x384xf32>
    %6 = tpu.matmul %4, %5, %cst {dimension_numbers = #tpu.dot_dimension_numbers<[1], [0], [0], [1], [0, 0, 1, 1], [], []>} : vector<2x512xbf16>, vector<512x384xbf16>, vector<2x384xf32> -> vector<2x384xf32>
    %c0_4 = arith.constant 0 : index
    %c0_5 = arith.constant 0 : index
    %7 = vector.load %arg8[%c0_4, %c0_5] : memref<1x384xf32, #tpu.memory_space<vmem>>, vector<1x384xf32>
    %8 = vector.broadcast %7 : vector<1x384xf32> to vector<2x384xf32>
    %9 = arith.addf %6, %8 : vector<2x384xf32>
    %10 = math.tanh %9 : vector<2x384xf32>
    %cst_6 = arith.constant 1.000000e-01 : f32
    %11 = vector.broadcast %cst_6 : f32 to vector<2x384xf32>
    %12 = arith.mulf %10, %11 : vector<2x384xf32>
    %c0_7 = arith.constant 0 : index
    %c0_8 = arith.constant 0 : index
    %13 = vector.load %arg9[%c0_7, %c0_8] : memref<2x384xf32, #tpu.memory_space<vmem>>, vector<2x384xf32>
    tpu.vector_store %arg9[%c0_7, %c0_8], %12 {strides = array<i32>} : memref<2x384xf32, #tpu.memory_space<vmem>>, vector<2x384xf32>,
    return
  }
  func.func @transform_0(%arg0: i32) -> (i32, i32) {
    %c0_i32 = arith.constant 0 : i32
    %c0_i32_0 = arith.constant 0 : i32
    %c0_i32_1 = arith.constant 0 : i32
    return %c0_i32, %c0_i32_0 : i32, i32
  }
  func.func @transform_1(%arg0: i32) -> (i32, i32) {
    %c0_i32 = arith.constant 0 : i32
    %c0_i32_0 = arith.constant 0 : i32
    %c0_i32_1 = arith.constant 0 : i32
    return %c0_i32, %c0_i32_0 : i32, i32
  }
  func.func @transform_2(%arg0: i32) -> (i32, i32) {
    %c0_i32 = arith.constant 0 : i32
    %c0_i32_0 = arith.constant 0 : i32
    %c0_i32_1 = arith.constant 0 : i32
    return %c0_i32, %c0_i32_0 : i32, i32
  }
  func.func @transform_3(%arg0: i32) -> (i32, i32) {
    %c0_i32 = arith.constant 0 : i32
    %c0_i32_0 = arith.constant 0 : i32
    %c0_i32_1 = arith.constant 0 : i32
    return %c0_i32, %c0_i32_0 : i32, i32
  }
  func.func @transform_4(%arg0: i32) -> (i32, i32) {
    %c0_i32 = arith.constant 0 : i32
    %c0_i32_0 = arith.constant 0 : i32
    %c0_i32_1 = arith.constant 0 : i32
    return %c0_i32, %c0_i32_0 : i32, i32
  }
  func.func @transform_5(%arg0: i32) -> (i32, i32) {
    %c0_i32 = arith.constant 0 : i32
    %c0_i32_0 = arith.constant 0 : i32
    %c0_i32_1 = arith.constant 0 : i32
    return %c0_i32, %c0_i32_0 : i32, i32
  }
  func.func @transform_6(%arg0: i32) -> (i32, i32) {
    %c0_i32 = arith.constant 0 : i32
    %c0_i32_0 = arith.constant 0 : i32
    return %c0_i32, %arg0 : i32, i32
  }
  func.func @transform_7(%arg0: i32) -> (i32, i32) {
    %c0_i32 = arith.constant 0 : i32
    %c0_i32_0 = arith.constant 0 : i32
    return %c0_i32, %arg0 : i32, i32
  }
  func.func @transform_8(%arg0: i32) -> (i32, i32) {
    %c0_i32 = arith.constant 0 : i32
    %c0_i32_0 = arith.constant 0 : i32
    return %c0_i32, %arg0 : i32, i32
  }
}

</mosaic_0001>

<bundles_post_ra>
// kernel: tpu_custom_call.1
= control target key start
LH: loop header
LB: loop body
LE: loop exit
PB: predicated region body
PF: predicated region fallthrough
CT: control target
= control target key end

     0   :  { %13 = vsyncpa [#allocation4], 0  ;;  %s4759_s0 = inlined_call_operand.hbm [shape: f32[2,16], index: 0, kind: input, shape index: {}]   ;;  %s4760_s1 = inlined_call_operand.hbm [shape: f32[2,16], index: 1, kind: input, shape index: {}]   ;;  %s4761_s2 = inlined_call_operand.hbm [shape: bf16[32,1024], index: 2, kind: input, shape index: {}]   ;;  %s4762_s3 = inlined_call_operand.hbm [shape: f32[1,1024], index: 3, kind: input, shape index: {}]   ;;  %s4763_s4 = inlined_call_operand.hbm [shape: bf16[1024,512], index: 4, kind: input, shape index: {}]   ;;  %s4764_s5 = inlined_call_operand.vmem [shape: f32[1,512], index: 5, kind: input, shape index: {}]   ;;  %s4765_s6 = inlined_call_operand.hbm [shape: bf16[512,384], index: 6, kind: input, shape index: {}]   ;;  %s4766_s7 = inlined_call_operand.vmem [shape: f32[1,384], index: 7, kind: input, shape index: {}]   ;;  %s4767_s8 = inlined_call_operand.hbm [shape: f32[2,384], index: 8, kind: output, shape index: {}]  }
   0x1   :  { %14 = vsyncpa [#allocation7], 0 }
   0x2   :  { %15 = vsyncpa [#allocation10], 0 }
   0x3   :  { %16 = vsyncpa [#allocation13], 0 }
   0x4   :  { %17 = vsyncpa [#allocation5], 0  ;;  %s4544_s27 = smov [#allocation6]   ;;  %s4545_s29 = smov [#allocation9]  }
   0x5   :  { %s34_s28 = sshll.u32 %s4544_s27, 4  ;;  %s56_s30 = sshll.u32 %s4545_s29, 4  ;;  %s35_s28 = int_to_ptr.vmem [resolvable:$true] %s34_s28  ;;  %s57_s30 = int_to_ptr.vmem [resolvable:$true] %s56_s30 }
   0x6   :  { %s4402_s9 = scalar_lea.vmem %s35_s28, 32  ;;  %p4407_p1 = scmp.lt.s32.totalorder %s35_s28, %s35_s28 }
   0x7   :  { %p4403_p0 = scmp.ne.s32.totalorder %s35_s28, %s4402_s9  ;;  %p4408_p2 = scmp.lt.s32.totalorder %s4402_s9, %s4402_s9 }
   0x9   :  { %p4409_p3 = por %p4408_p2, %p4407_p1 }
   0xb   :  { %p4410_p4 = pnand %p4409_p3, %p4403_p0 }
   0xd   :  { %4413 = shalt.err (!%p4410_p4)
}
   0xe   :  { %37 = dma.hbm_to_vmem [thread:$0]  %s4760_s1, 32, %s35_s28, [#allocation7]  }
   0xf   :  { %s4422_s12 = scalar_lea.vmem %s57_s30, 128  ;;  %p4427_p6 = scmp.lt.s32.totalorder %s57_s30, %s57_s30 }
  0x10   :  { %p4423_p5 = scmp.ne.s32.totalorder %s57_s30, %s4422_s12  ;;  %p4428_p7 = scmp.lt.s32.totalorder %s4422_s12, %s4422_s12 }
  0x12   :  { %p4429_p8 = por %p4428_p7, %p4427_p6 }
  0x14   :  { %p4430_p9 = pnand %p4429_p8, %p4423_p5 }
  0x16   :  { %4433 = shalt.err (!%p4430_p9)
}
  0x17   :  { %59 = dma.hbm_to_vmem [thread:$0]  %s4762_s3, 128, %s57_s30, [#allocation10]  }
  0x18   :  { %s4546_s15 = smov [#allocation3]   ;;  %s4547_s17 = smov [#allocation8]  }
  0x19   :  { %s24_s16 = sshll.u32 %s4546_s15, 4  ;;  %s43_s18 = sshll.u32 %s4547_s17, 4  ;;  %s25_s16 = int_to_ptr.vmem [resolvable:$true] %s24_s16  ;;  %s44_s18 = int_to_ptr.vmem [resolvable:$true] %s43_s18 }
  0x1a   :  { %s4442_s19 = scalar_lea.vmem %s25_s16, 32  ;;  %p4447_p11 = scmp.lt.s32.totalorder %s25_s16, %s25_s16 }
  0x1b   :  { %p4443_p10 = scmp.ne.s32.totalorder %s25_s16, %s4442_s19  ;;  %p4448_p12 = scmp.lt.s32.totalorder %s4442_s19, %s4442_s19 }
  0x1d   :  { %p4449_p13 = por %p4448_p12, %p4447_p11 }
  0x1f   :  { %p4450_p0 = pnand %p4449_p13, %p4443_p10 }
  0x21   :  { %4453 = shalt.err (!%p4450_p0)
}
  0x22   :  { %27 = dma.hbm_to_vmem [thread:$0]  %s4759_s0, 32, %s25_s16, [#allocation4]  }
  0x23   :  { %s4462_s21 = scalar_lea.vmem %s44_s18, 2048  ;;  %p4467_p2 = scmp.lt.s32.totalorder %s44_s18, %s44_s18 }
  0x24   :  { %p4463_p1 = scmp.ne.s32.totalorder %s44_s18, %s4462_s21  ;;  %p4468_p3 = scmp.lt.s32.totalorder %s4462_s21, %s4462_s21 }
  0x26   :  { %p4469_p4 = por %p4468_p3, %p4467_p2 }
  0x28   :  { %p4470_p5 = pnand %p4469_p4, %p4463_p1 }
  0x2a   :  { %4473 = shalt.err (!%p4470_p5)
}
  0x2b   :  { %s4548_s3 = smov 512   ;;  %s4549_s22 = smov 32  }
  0x2c   :  { %49 = dma.hbm_to_vmem [thread:$0]  %s4761_s2, 2048, %s44_s18, [#allocation7], %s4548_s3, %s4548_s3, %s4549_s22  }
  0x2d   :  { %s4550_s25 = smov [#allocation11]  }
  0x2e   :  { %s65_s26 = sshll.u32 %s4550_s25, 4  ;;  %s66_s26 = int_to_ptr.vmem [resolvable:$true] %s65_s26 }
  0x2f   :  { %s4482_s27 = scalar_lea.vmem %s66_s26, 32768  ;;  %p4487_p7 = scmp.lt.s32.totalorder %s66_s26, %s66_s26 }
  0x30   :  { %p4483_p6 = scmp.ne.s32.totalorder %s66_s26, %s4482_s27  ;;  %p4488_p8 = scmp.lt.s32.totalorder %s4482_s27, %s4482_s27 }
  0x32   :  { %p4489_p9 = por %p4488_p8, %p4487_p7 }
  0x34   :  { %p4490_p10 = pnand %p4489_p9, %p4483_p6 }
  0x36   :  { %4493 = shalt.err (!%p4490_p10)
}
  0x37   :  { %s4551_s0 = smov 256   ;;  %s4552_s28 = smov 16  }
  0x38   :  { %71 = dma.hbm_to_vmem [thread:$0]  %s4763_s4, 32768, %s66_s26, [#allocation10], %s4551_s0, %s4551_s0, %s4552_s28  }
  0x39   :  { %s4553_s9 = smov [#allocation12]  }
  0x3a   :  { %s79_s10 = sshll.u32 %s4553_s9, 4  ;;  %s80_s10 = int_to_ptr.vmem [resolvable:$true] %s79_s10 }
  0x3b   :  { %s4502_s2 = scalar_lea.vmem %s80_s10, 12288  ;;  %p4507_p12 = scmp.lt.s32.totalorder %s80_s10, %s80_s10 }
  0x3c   :  { %p4503_p11 = scmp.ne.s32.totalorder %s80_s10, %s4502_s2  ;;  %p4508_p13 = scmp.lt.s32.totalorder %s4502_s2, %s4502_s2 }
  0x3e   :  { %p4509_p0 = por %p4508_p13, %p4507_p12 }
  0x40   :  { %p4510_p1 = pnand %p4509_p0, %p4503_p11 }
  0x42   :  { %4513 = shalt.err (!%p4510_p1)
}
  0x43   :  { %s4554_s11 = smov 192   ;;  %s4555_s12 = smov 12  }
  0x44   :  { %85 = dma.hbm_to_vmem [thread:$0]  %s4765_s6, 12288, %s80_s10, [#allocation13], %s4554_s11, %s4554_s11, %s4555_s12  }
  0x45   :  { %4534 = dma.done.wait [#allocation4], 32  }
  0x46   :  { %4535 = vsyncadd [#allocation4], 4294967264 }
  0x47   :  { %4536 = dma.done.wait [#allocation7], 2080  }
  0x48   :  { %4537 = vsyncadd [#allocation7], 4294965216 }
  0x49   :  { %4538 = dma.done.wait [#allocation10], 32896  }
  0x4a   :  { %4539 = vsyncadd [#allocation10], 4294934400 }
  0x4b   :  { %4540 = dma.done.wait [#allocation13], 12288  }
  0x4c   :  { %4541 = vsyncadd [#allocation13], 4294955008  ;;  %v4556_v0 = vmov 0   ;;  %v123_v1 = vld [vmem:[#allocation8 + $0x40] sm:$0xff]  ;;  %v124_v3 = vld [vmem:[#allocation8 + $0x48] sm:$0xff]  ;;  %vm171_vm0 = vcmask 130048  }
  0x4d   :  { %207 = vmatprep.mubr.bf16.mxu0 %v4556_v0  ;;  %248 = vmatprep.mubr.bf16.mxu1 %v4556_v0  ;;  %v127_v2 = vld [vmem:[#allocation8 + $0x60] sm:$0xff]  ;;  %v128_v5 = vld [vmem:[#allocation8 + $0x68] sm:$0xff]  ;;  %v113_v7 = vld [vmem:[#allocation6] sm:$0x3] }
  0x4e   :  { %v3441_v4 = vcombine.high %v123_v1, %v127_v2  ;;  %v3440_v6 = vcombine.low %v123_v1, %v127_v2  ;;  %v125_v8 = vld [vmem:[#allocation8 + $0x50] sm:$0xff]  ;;  %v3443_v9 = vcombine.high %v124_v3, %v128_v5  ;;  %v3442_v10 = vcombine.low %v124_v3, %v128_v5  ;;  %v126_v12 = vld [vmem:[#allocation8 + $0x58] sm:$0xff]  ;;  %v115_v17 = vld [vmem:[#allocation8] sm:$0xff] }
  0x4f   :  { %v129_v11 = vld [vmem:[#allocation8 + $0x70] sm:$0xff]  ;;  %v130_v13 = vld [vmem:[#allocation8 + $0x78] sm:$0xff]  ;;  %v114_v14 = vpack.c.bf16 %v113_v7, %v113_v7  ;;  %v119_v18 = vld [vmem:[#allocation8 + $0x20] sm:$0xff] }
  0x50   :  { %189 = vmatprep.subr.bf16.mxu0 %v3441_v4  ;;  %v3445_v15 = vcombine.high %v125_v8, %v129_v11  ;;  %v3447_v16 = vcombine.high %v126_v12, %v130_v13  ;;  %230 = vmatprep.subr.bf16.mxu1 %v3443_v9  ;;  %v3444_v19 = vcombine.low %v125_v8, %v129_v11  ;;  %v116_v20 = vld [vmem:[#allocation8 + $0x8] sm:$0xff]  ;;  %v117_v25 = vld [vmem:[#allocation8 + $0x10] sm:$0xff]  ;;  %v118_v28 = vld [vmem:[#allocation8 + $0x18] sm:$0xff] }
  0x51   :  { %190 = vmatpush1.bf16.msra.mxu0 %v3440_v6  ;;  %v120_v21 = vld [vmem:[#allocation8 + $0x28] sm:$0xff]  ;;  %231 = vmatpush1.bf16.msra.mxu1 %v3442_v10  ;;  %v3446_v22 = vcombine.low %v126_v12, %v130_v13  ;;  %v3453_v23 = vcombine.high %v115_v17, %v119_v18  ;;  %v121_v26 = vld [vmem:[#allocation8 + $0x30] sm:$0xff]  ;;  %v3452_v27 = vcombine.low %v115_v17, %v119_v18  ;;  %v122_v29 = vld [vmem:[#allocation8 + $0x38] sm:$0xff] }
  0x52   :  { %271 = vmatprep.subr.bf16.mxu0 %v3445_v15  ;;  %312 = vmatprep.subr.bf16.mxu1 %v3447_v16  ;;  %v3455_v24 = vcombine.high %v116_v20, %v120_v21  ;;  %v3454_v30 = vcombine.low %v116_v20, %v120_v21  ;;  %v3457_v31 = vcombine.high %v117_v25, %v121_v26  ;;  %v111_v33 = vld [vmem:[#allocation3] sm:$0x3]  ;;  %v3876_v39 = vld [vmem:[#allocation11 + $0xe0] ss:$16 sps:$4 sm:$0xff]  }
  0x53   :  { %v3459_v32 = vcombine.high %v118_v28, %v122_v29  ;;  %v112_v34 = vpack.c.bf16 %v111_v33, %v111_v33  ;;  %v3456_v35 = vcombine.low %v117_v25, %v121_v26  ;;  %v3458_v36 = vcombine.low %v118_v28, %v122_v29  ;;  %v3878_v37 = vld [vmem:[#allocation11 + $0xe4] ss:$16 sps:$4 sm:$0xff]   ;;  %v3879_v40 = vld [vmem:[#allocation11 + $0x2e0] ss:$16 sps:$4 sm:$0xff]  }
  0x54   :  { %3448 = vmatmul.mubr.msk.bf16.vlgmr.msra.gmra.mxu0 %vm171_vm0, %v114_v14  ;;  %3449 = vmatmul.mubr.msk.bf16.vlgmr.msra.gmra.mxu1 %vm171_vm0, %v114_v14  ;;  %v3881_v38 = vld [vmem:[#allocation11 + $0x2e4] ss:$16 sps:$4 sm:$0xff]   ;;  %v3882_v43 = vld [vmem:[#allocation11 + $0xc0] ss:$16 sps:$4 sm:$0xff]  }
  0x55   :  { %272 = vmatpush1.bf16.msra.mxu0 %v3444_v19  ;;  %313 = vmatpush1.bf16.msra.mxu1 %v3446_v22  ;;  %v3884_v41 = vld [vmem:[#allocation11 + $0xc4] ss:$16 sps:$4 sm:$0xff]   ;;  %v3885_v44 = vld [vmem:[#allocation11 + $0x2c0] ss:$16 sps:$4 sm:$0xff]  }
  0x56   :  { %289 = vmatprep.mubr.bf16.mxu0 %v4556_v0  ;;  %330 = vmatprep.mubr.bf16.mxu1 %v4556_v0  ;;  %v3887_v42 = vld [vmem:[#allocation11 + $0x2c4] ss:$16 sps:$4 sm:$0xff]   ;;  %v3888_v47 = vld [vmem:[#allocation11 + $0xa0] ss:$16 sps:$4 sm:$0xff]  }
  0x57   :  { %396 = vmatprep.subr.bf16.mxu0 %v3453_v23  ;;  %437 = vmatprep.subr.bf16.mxu1 %v3455_v24  ;;  %v3890_v45 = vld [vmem:[#allocation11 + $0xa4] ss:$16 sps:$4 sm:$0xff]   ;;  %v3891_v48 = vld [vmem:[#allocation11 + $0x2a0] ss:$16 sps:$4 sm:$0xff]  }
  0x58   :  { %v3893_v46 = vld [vmem:[#allocation11 + $0x2a4] ss:$16 sps:$4 sm:$0xff]   ;;  %v3894_v51 = vld [vmem:[#allocation11 + $0x80] ss:$16 sps:$4 sm:$0xff]  }
  0x59   :  { %v3896_v49 = vld [vmem:[#allocation11 + $0x84] ss:$16 sps:$4 sm:$0xff]   ;;  %v3897_v52 = vld [vmem:[#allocation11 + $0x280] ss:$16 sps:$4 sm:$0xff]  }
  0x5a   :  { %v3899_v50 = vld [vmem:[#allocation11 + $0x284] ss:$16 sps:$4 sm:$0xff]   ;;  %v3900_v55 = vld [vmem:[#allocation11 + $0x60] ss:$16 sps:$4 sm:$0xff]  }
  0x5b   :  { %v3902_v53 = vld [vmem:[#allocation11 + $0x64] ss:$16 sps:$4 sm:$0xff]   ;;  %v3903_v56 = vld [vmem:[#allocation11 + $0x260] ss:$16 sps:$4 sm:$0xff]  }
  0x5c   :  { %3450 = vmatmul.mubr.msk.bf16.vlgmr.msra.gmra.mxu0 %vm171_vm0, %v114_v14  ;;  %3451 = vmatmul.mubr.msk.bf16.vlgmr.msra.gmra.mxu1 %vm171_vm0, %v114_v14  ;;  %v3905_v54 = vld [vmem:[#allocation11 + $0x264] ss:$16 sps:$4 sm:$0xff]   ;;  %v3906_v59 = vld [vmem:[#allocation11 + $0x40] ss:$16 sps:$4 sm:$0xff]  }
  0x5d   :  { %397 = vmatpush1.bf16.msra.mxu0 %v3452_v27  ;;  %438 = vmatpush1.bf16.msra.mxu1 %v3454_v30  ;;  %v3908_v57 = vld [vmem:[#allocation11 + $0x44] ss:$16 sps:$4 sm:$0xff]   ;;  %v3909_v60 = vld [vmem:[#allocation11 + $0x240] ss:$16 sps:$4 sm:$0xff]  }
  0x5e   :  { %414 = vmatprep.mubr.bf16.mxu0 %v4556_v0  ;;  %455 = vmatprep.mubr.bf16.mxu1 %v4556_v0  ;;  %v3911_v58 = vld [vmem:[#allocation11 + $0x244] ss:$16 sps:$4 sm:$0xff]   ;;  %v3912_v63 = vld [vmem:[#allocation11 + $0x20] ss:$16 sps:$4 sm:$0xff]  }
  0x5f   :  { %478 = vmatprep.subr.bf16.mxu0 %v3457_v31  ;;  %519 = vmatprep.subr.bf16.mxu1 %v3459_v32  ;;  %v3914_v61 = vld [vmem:[#allocation11 + $0x24] ss:$16 sps:$4 sm:$0xff]   ;;  %v3918_v3 = vld [vmem:[#allocation11] ss:$16 sps:$4 sm:$0xff]  }
  0x60   :  { %v3917_v62 = vld [vmem:[#allocation11 + $0x224] ss:$16 sps:$4 sm:$0xff]   ;;  %v3921_v4 = vld [vmem:[#allocation11 + $0x200] ss:$16 sps:$4 sm:$0xff]  }
  0x61   :  { %v3920_v1 = vld [vmem:[#allocation11 + $0x4] ss:$16 sps:$4 sm:$0xff]   ;;  %v3924_v7 = vld [vmem:[#allocation11 + $0x1e0] ss:$16 sps:$4 sm:$0xff]  }
  0x62   :  { %v3923_v2 = vld [vmem:[#allocation11 + $0x204] ss:$16 sps:$4 sm:$0xff]   ;;  %v3927_v8 = vld [vmem:[#allocation11 + $0x3e0] ss:$16 sps:$4 sm:$0xff]  }
  0x63   :  { %v3926_v5 = vld [vmem:[#allocation11 + $0x1e4] ss:$16 sps:$4 sm:$0xff]   ;;  %v3930_v11 = vld [vmem:[#allocation11 + $0x1c0] ss:$16 sps:$4 sm:$0xff]  }
  0x64   :  { %3460 = vmatmul.mubr.msk.bf16.vlgmr.msra.gmra.mxu0 %vm171_vm0, %v112_v34  ;;  %3461 = vmatmul.mubr.msk.bf16.vlgmr.msra.gmra.mxu1 %vm171_vm0, %v112_v34  ;;  %v3929_v6 = vld [vmem:[#allocation11 + $0x3e4] ss:$16 sps:$4 sm:$0xff]   ;;  %v3933_v12 = vld [vmem:[#allocation11 + $0x3c0] ss:$16 sps:$4 sm:$0xff]  }
  0x65   :  { %479 = vmatpush1.bf16.msra.mxu0 %v3456_v35  ;;  %520 = vmatpush1.bf16.msra.mxu1 %v3458_v36  ;;  %v3932_v9 = vld [vmem:[#allocation11 + $0x1c4] ss:$16 sps:$4 sm:$0xff]   ;;  %v3936_v15 = vld [vmem:[#allocation11 + $0x1a0] ss:$16 sps:$4 sm:$0xff]  }
  0x66   :  { %496 = vmatprep.mubr.bf16.mxu0 %v4556_v0  ;;  %537 = vmatprep.mubr.bf16.mxu1 %v4556_v0  ;;  %v3915_v0 = vld [vmem:[#allocation11 + $0x220] ss:$16 sps:$4 sm:$0xff]   ;;  %v3935_v10 = vld [vmem:[#allocation11 + $0x3c4] ss:$16 sps:$4 sm:$0xff]  }
  0x67   :  { %2186 = vmatprep.subr.bf16.mxu0 %v3878_v37  ;;  %2227 = vmatprep.subr.bf16.mxu1 %v3881_v38  ;;  %v3938_v13 = vld [vmem:[#allocation11 + $0x1a4] ss:$16 sps:$4 sm:$0xff]   ;;  %v3939_v16 = vld [vmem:[#allocation11 + $0x3a0] ss:$16 sps:$4 sm:$0xff]  }
  0x68   :  { %v3941_v14 = vld [vmem:[#allocation11 + $0x3a4] ss:$16 sps:$4 sm:$0xff]   ;;  %v3942_v19 = vld [vmem:[#allocation11 + $0x180] ss:$16 sps:$4 sm:$0xff]  }
  0x69   :  { %v3944_v17 = vld [vmem:[#allocation11 + $0x184] ss:$16 sps:$4 sm:$0xff]   ;;  %v3945_v20 = vld [vmem:[#allocation11 + $0x380] ss:$16 sps:$4 sm:$0xff]  }
  0x6a   :  { %v3947_v18 = vld [vmem:[#allocation11 + $0x384] ss:$16 sps:$4 sm:$0xff]   ;;  %v3948_v23 = vld [vmem:[#allocation11 + $0x160] ss:$16 sps:$4 sm:$0xff]  }
  0x6b   :  { %v3950_v21 = vld [vmem:[#allocation11 + $0x164] ss:$16 sps:$4 sm:$0xff]   ;;  %v3951_v24 = vld [vmem:[#allocation11 + $0x360] ss:$16 sps:$4 sm:$0xff]  }
  0x6c   :  { %3462 = vmatmul.mubr.msk.bf16.vlgmr.msra.gmra.mxu0 %vm171_vm0, %v112_v34  ;;  %3463 = vmatmul.mubr.msk.bf16.vlgmr.msra.gmra.mxu1 %vm171_vm0, %v112_v34  ;;  %v3953_v22 = vld [vmem:[#allocation11 + $0x364] ss:$16 sps:$4 sm:$0xff]   ;;  %v3954_v27 = vld [vmem:[#allocation11 + $0x140] ss:$16 sps:$4 sm:$0xff]  }
  0x6d   :  { %2187 = vmatpush1.bf16.msra.mxu0 %v3876_v39  ;;  %2228 = vmatpush1.bf16.msra.mxu1 %v3879_v40  ;;  %v3956_v25 = vld [vmem:[#allocation11 + $0x144] ss:$16 sps:$4 sm:$0xff]   ;;  %v3957_v28 = vld [vmem:[#allocation11 + $0x340] ss:$16 sps:$4 sm:$0xff]  }
  0x6e   :  { %2188 = vmatprep.subr.bf16.mxu0 %v3884_v41  ;;  %2229 = vmatprep.subr.bf16.mxu1 %v3887_v42  ;;  %v3959_v26 = vld [vmem:[#allocation11 + $0x344] ss:$16 sps:$4 sm:$0xff]   ;;  %v3960_v31 = vld [vmem:[#allocation11 + $0x120] ss:$16 sps:$4 sm:$0xff]  }
  0x6f   :  { %v3962_v29 = vld [vmem:[#allocation11 + $0x124] ss:$16 sps:$4 sm:$0xff]   ;;  %v3963_v32 = vld [vmem:[#allocation11 + $0x320] ss:$16 sps:$4 sm:$0xff]  }
  0x70   :  { %v3965_v30 = vld [vmem:[#allocation11 + $0x324] ss:$16 sps:$4 sm:$0xff]   ;;  %v3966_v35 = vld [vmem:[#allocation11 + $0x100] ss:$16 sps:$4 sm:$0xff]  }
  0x71   :  { %2189 = vmatpush1.bf16.msra.mxu0 %v3882_v43  ;;  %2230 = vmatpush1.bf16.msra.mxu1 %v3885_v44  ;;  %v3968_v33 = vld [vmem:[#allocation11 + $0x104] ss:$16 sps:$4 sm:$0xff]   ;;  %v3969_v36 = vld [vmem:[#allocation11 + $0x300] ss:$16 sps:$4 sm:$0xff]   ;;  %v548_v43 = vlaneseq }
  0x72   :  { %2190 = vmatprep.subr.bf16.mxu0 %v3890_v45  ;;  %2231 = vmatprep.subr.bf16.mxu1 %v3893_v46  ;;  %v3971_v34 = vld [vmem:[#allocation11 + $0x304] ss:$16 sps:$4 sm:$0xff]  }
  0x73   :  { %v3974_v37 = vld [vmem:[#allocation11 + $0x4e4] ss:$16 sps:$4 sm:$0xff]  }
  0x74   :  { %v3977_v38 = vld [vmem:[#allocation11 + $0x6e4] ss:$16 sps:$4 sm:$0xff]  }
  0x75   :  { %2191 = vmatpush1.bf16.msra.mxu0 %v3888_v47  ;;  %2232 = vmatpush1.bf16.msra.mxu1 %v3891_v48  ;;  %v4638_v48 = vshrl.u32 %v548_v43, 7 }
  0x76   :  { %2192 = vmatprep.subr.bf16.mxu0 %v3896_v49  ;;  %2233 = vmatprep.subr.bf16.mxu1 %v3899_v50 }
  0x79   :  { %2193 = vmatpush1.bf16.msra.mxu0 %v3894_v51  ;;  %2234 = vmatpush1.bf16.msra.mxu1 %v3897_v52 }
  0x7a   :  { %2194 = vmatprep.subr.bf16.mxu0 %v3902_v53  ;;  %2235 = vmatprep.subr.bf16.mxu1 %v3905_v54  ;;  %v4643_v53 = vsub.s32 0, %v4638_v48 }
  0x7d   :  { %2195 = vmatpush1.bf16.msra.mxu0 %v3900_v55  ;;  %2236 = vmatpush1.bf16.msra.mxu1 %v3903_v56  ;;  %v546_v55 = vld [vmem:[#allocation9] sm:$0xff]  ;;  %v4646_v56 = vsub.s32 2, %v4638_v48 }
  0x7e   :  { %2196 = vmatprep.subr.bf16.mxu0 %v3908_v57  ;;  %2237 = vmatprep.subr.bf16.mxu1 %v3911_v58  ;;  %v4649_v58 = vsub.s32 1, %v4638_v48 }
  0x81   :  { %2197 = vmatpush1.bf16.msra.mxu0 %v3906_v59  ;;  %2238 = vmatpush1.bf16.msra.mxu1 %v3909_v60  ;;  %v562_v60 = vsub.s32 3, %v4638_v48 }
  0x82   :  { %2198 = vmatprep.subr.bf16.mxu0 %v3914_v61  ;;  %2239 = vmatprep.subr.bf16.mxu1 %v3917_v62  ;;  %v551_v62 = vrot.slane %v546_v55, %v4643_v53 }
  0x85   :  { %2199 = vmatpush1.bf16.msra.mxu0 %v3912_v63  ;;  %2240 = vmatpush1.bf16.msra.mxu1 %v3915_v0  ;;  %v559_v0 = vrot.slane %v546_v55, %v4646_v56 }
  0x86   :  { %2200 = vmatprep.subr.bf16.mxu0 %v3920_v1  ;;  %2241 = vmatprep.subr.bf16.mxu1 %v3923_v2 }
  0x89   :  { %2201 = vmatpush1.bf16.msra.mxu0 %v3918_v3  ;;  %2242 = vmatpush1.bf16.msra.mxu1 %v3921_v4  ;;  %v555_v3 = vrot.slane %v546_v55, %v4649_v58 }
  0x8a   :  { %2202 = vmatprep.subr.bf16.mxu0 %v3926_v5  ;;  %2243 = vmatprep.subr.bf16.mxu1 %v3929_v6  ;;  %v563_v6 = vrot.slane %v546_v55, %v562_v60 }
  0x8d   :  { %2203 = vmatpush2.bf16.msra.mxu0 %v3924_v7  ;;  %2244 = vmatpush2.bf16.msra.mxu1 %v3927_v8 }
  0x8e   :  { %2204 = vmatprep.subr.bf16.mxu0 %v3932_v9  ;;  %2245 = vmatprep.subr.bf16.mxu1 %v3935_v10  ;;  %v566_v10 = vsub.s32 4, %v4638_v48 }
  0x91   :  { %2205 = vmatpush2.bf16.msra.mxu0 %v3930_v11  ;;  %2246 = vmatpush2.bf16.msra.mxu1 %v3933_v12 }
  0x92   :  { %2206 = vmatprep.subr.bf16.mxu0 %v3938_v13  ;;  %2247 = vmatprep.subr.bf16.mxu1 %v3941_v14  ;;  %v574_v14 = vsub.s32 6, %v4638_v48 }
  0x95   :  { %2207 = vmatpush2.bf16.msra.mxu0 %v3936_v15  ;;  %2248 = vmatpush2.bf16.msra.mxu1 %v3939_v16 }
  0x96   :  { %2208 = vmatprep.subr.bf16.mxu0 %v3944_v17  ;;  %2249 = vmatprep.subr.bf16.mxu1 %v3947_v18  ;;  %v570_v18 = vsub.s32 5, %v4638_v48 }
  0x99   :  { %2209 = vmatpush2.bf16.msra.mxu0 %v3942_v19  ;;  %2250 = vmatpush2.bf16.msra.mxu1 %v3945_v20 }
  0x9a   :  { %2210 = vmatprep.subr.bf16.mxu0 %v3950_v21  ;;  %2251 = vmatprep.subr.bf16.mxu1 %v3953_v22  ;;  %v578_v22 = vsub.s32 7, %v4638_v48 }
  0x9d   :  { %2211 = vmatpush2.bf16.msra.mxu0 %v3948_v23  ;;  %2252 = vmatpush2.bf16.msra.mxu1 %v3951_v24 }
  0x9e   :  { %2212 = vmatprep.subr.bf16.mxu0 %v3956_v25  ;;  %2253 = vmatprep.subr.bf16.mxu1 %v3959_v26  ;;  %v567_v25 = vrot.slane %v546_v55, %v566_v10 }
  0xa1   :  { %2213 = vmatpush2.bf16.msra.mxu0 %v3954_v27  ;;  %2254 = vmatpush2.bf16.msra.mxu1 %v3957_v28 }
  0xa2   :  { %2214 = vmatprep.subr.bf16.mxu0 %v3962_v29  ;;  %2255 = vmatprep.subr.bf16.mxu1 %v3965_v30  ;;  %v575_v29 = vrot.slane %v546_v55, %v574_v14  ;;  %v3993_v14 = vld [vmem:[#allocation11 + $0x680] ss:$16 sps:$4 sm:$0xff]  }
  0xa5   :  { %2215 = vmatpush2.bf16.msra.mxu0 %v3960_v31  ;;  %2256 = vmatpush2.bf16.msra.mxu1 %v3963_v32 }
  0xa6   :  { %2216 = vmatprep.subr.bf16.mxu0 %v3968_v33  ;;  %2257 = vmatprep.subr.bf16.mxu1 %v3971_v34  ;;  %v571_v33 = vrot.slane %v546_v55, %v570_v18  ;;  %v3999_v18 = vld [vmem:[#allocation11 + $0x660] ss:$16 sps:$4 sm:$0xff]  }
  0xa9   :  { %2217 = vmatpush2.bf16.msra.mxu0 %v3966_v35  ;;  %2258 = vmatpush2.bf16.msra.mxu1 %v3969_v36 }
  0xaa   :  { %2268 = vmatprep.subr.bf16.mxu0 %v3974_v37  ;;  %2309 = vmatprep.subr.bf16.mxu1 %v3977_v38  ;;  %v579_v37 = vrot.slane %v546_v55, %v578_v22  ;;  %v3983_v55 = vld [vmem:[#allocation11 + $0x6c4] ss:$16 sps:$4 sm:$0xff]   ;;  %v4005_v22 = vld [vmem:[#allocation11 + $0x640] ss:$16 sps:$4 sm:$0xff]  }
 0x114   :  { %v209_v39 = vpop.f32.mrf.mxu0  ;;  %v250_v40 = vpop.f32.mrf.mxu1 }
 0x116   :  { %v211_v41 = vpop.f32.mrf.mxu0  ;;  %v252_v42 = vpop.f32.mrf.mxu1 }
 0x118   :  { %v213_v44 = vpop.f32.mrf.mxu0  ;;  %v254_v45 = vpop.f32.mrf.mxu1 }
 0x11a   :  { %v214_v46 = vpop.f32.mrf.mxu0  ;;  %v255_v47 = vpop.f32.mrf.mxu1 }
 0x11b   :  { %v3975_v46 = vld [vmem:[#allocation11 + $0x6e0] ss:$16 sps:$4 sm:$0xff]   ;;  %v3980_v47 = vld [vmem:[#allocation11 + $0x4c4] ss:$16 sps:$4 sm:$0xff]  }
 0x11c   :  { %v291_v49 = vpop.f32.mrf.mxu0  ;;  %v332_v50 = vpop.f32.mrf.mxu1 }
 0x11e   :  { %v293_v51 = vpop.f32.mrf.mxu0  ;;  %v4640_v52 = vpop.f32.mrf.mxu1 }
 0x120   :  { %v295_v54 = vpop.f32.mrf.mxu0  ;;  %v336_v57 = vpop.f32.mrf.mxu1 }
 0x122   :  { %v296_v59 = vpop.f32.mrf.mxu0  ;;  %v337_v61 = vpop.f32.mrf.mxu1 }
 0x124   :  { %v416_v63 = vpop.f32.mrf.mxu0  ;;  %v457_v2 = vpop.f32.mrf.mxu1 }
 0x125   :  { %v417_v1 = vadd.f32 %v416_v63, %v209_v39  ;;  %v458_v4 = vadd.f32 %v457_v2, %v250_v40  ;;  %v3972_v40 = vld [vmem:[#allocation11 + $0x4e0] ss:$16 sps:$4 sm:$0xff]  }
 0x126   :  { %v418_v5 = vpop.f32.mrf.mxu0  ;;  %v459_v9 = vpop.f32.mrf.mxu1  ;;  %v3981_v63 = vld [vmem:[#allocation11 + $0x6c0] ss:$16 sps:$4 sm:$0xff]  }
 0x127   :  { %v588_v7 = vadd.f32 %v551_v62, %v417_v1  ;;  %v419_v8 = vadd.f32 %v418_v5, %v211_v41  ;;  %v590_v11 = vadd.f32 %v559_v0, %v458_v4  ;;  %v460_v12 = vadd.f32 %v459_v9, %v252_v42  ;;  %v3978_v62 = vld [vmem:[#allocation11 + $0x4c0] ss:$16 sps:$4 sm:$0xff]   ;;  %v3989_v4 = vld [vmem:[#allocation11 + $0x6a4] ss:$16 sps:$4 sm:$0xff]  }
 0x128   :  { %v420_v13 = vpop.f32.mrf.mxu0  ;;  %v461_v17 = vpop.f32.mrf.mxu1  ;;  %v3987_v9 = vld [vmem:[#allocation11 + $0x6a0] ss:$16 sps:$4 sm:$0xff]  }
 0x129   :  { %vm596_vm1 = vcmp.gt.f32.partialorder %v588_v7, 0.0  ;;  %v604_v15 = vmul.f32 0.01, %v588_v7  ;;  %v589_v16 = vadd.f32 %v555_v3, %v419_v8  ;;  %vm598_vm2 = vcmp.gt.f32.partialorder %v590_v11, 0.0  ;;  %v3990_v13 = vld [vmem:[#allocation11 + $0x480] ss:$16 sps:$4 sm:$0xff]  }
 0x12a   :  { %v606_v19 = vmul.f32 0.01, %v590_v11  ;;  %v591_v20 = vadd.f32 %v563_v6, %v460_v12  ;;  %v421_v21 = vpop.f32.mrf.mxu0  ;;  %v462_v24 = vpop.f32.mrf.mxu1  ;;  %v3984_v6 = vld [vmem:[#allocation11 + $0x4a0] ss:$16 sps:$4 sm:$0xff]   ;;  %v3995_v12 = vld [vmem:[#allocation11 + $0x684] ss:$16 sps:$4 sm:$0xff]  }
 0x12b   :  { %v605_v23 = vmul.f32 0.01, %v589_v16  ;;  %vm597_vm3 = vcmp.gt.f32.partialorder %v589_v16, 0.0  ;;  %v612_v26 = vsel %vm596_vm1, %v588_v7, %v604_v15  ;;  %v3998_v15 = vld [vmem:[#allocation11 + $0x464] ss:$16 sps:$4 sm:$0xff]  }
 0x12c   :  { %v607_v27 = vmul.f32 0.01, %v591_v20  ;;  %v498_v28 = vpop.f32.mrf.mxu0  ;;  %vm599_vm4 = vcmp.gt.f32.partialorder %v591_v20, 0.0  ;;  %v614_v30 = vsel %vm598_vm2, %v590_v11, %v606_v19  ;;  %v539_v32 = vpop.f32.mrf.mxu1  ;;  %v4663_v41 = vpack.c.bf16 %v612_v26, %v612_v26  ;;  %v3992_v11 = vld [vmem:[#allocation11 + $0x484] ss:$16 sps:$4 sm:$0xff]  }
 0x12d   :  { %v499_v31 = vadd.f32 %v498_v28, %v291_v49  ;;  %v613_v34 = vsel %vm597_vm3, %v589_v16, %v605_v23  ;;  %v540_v35 = vadd.f32 %v539_v32, %v332_v50  ;;  %v4669_v49 = vpack.c.bf16 %v614_v30, %v614_v30  ;;  %v4001_v16 = vld [vmem:[#allocation11 + $0x664] ss:$16 sps:$4 sm:$0xff]   ;;  %v3996_v17 = vld [vmem:[#allocation11 + $0x460] ss:$16 sps:$4 sm:$0xff]  }
 0x12e   :  { %v500_v36 = vpop.f32.mrf.mxu0  ;;  %v4661_v38 = vpack.c.bf16 %v613_v34, %v613_v34  ;;  %v615_v39 = vsel %vm599_vm4, %v591_v20, %v607_v27  ;;  %v541_v44 = vpop.f32.mrf.mxu1  ;;  %v4004_v19 = vld [vmem:[#allocation11 + $0x444] ss:$16 sps:$4 sm:$0xff]   ;;  %v4002_v21 = vld [vmem:[#allocation11 + $0x440] ss:$16 sps:$4 sm:$0xff]  }
 0x12f   :  { %v4665_v42 = vadd.f32 %v567_v25, %v499_v31  ;;  %v501_v43 = vadd.f32 %v500_v36, %v293_v51  ;;  %v4667_v45 = vpack.c.bf16 %v615_v39, %v615_v39  ;;  %v4671_v54 = vadd.f32 %v575_v29, %v540_v35  ;;  %v4007_v20 = vld [vmem:[#allocation11 + $0x644] ss:$16 sps:$4 sm:$0xff]   ;;  %v4008_v25 = vld [vmem:[#allocation11 + $0x420] ss:$16 sps:$4 sm:$0xff]  }
 0x130   :  { %v542_v50 = vadd.f32 %v541_v44, %v4640_v52  ;;  %2218 = vmatprep.mubr.bf16.mxu0 %v4661_v38  ;;  %v502_v57 = vpop.f32.mrf.mxu0  ;;  %v543_v51 = vpop.f32.mrf.mxu1  ;;  %v3986_v52 = vld [vmem:[#allocation11 + $0x4a4] ss:$16 sps:$4 sm:$0xff]   ;;  %v4011_v26 = vld [vmem:[#allocation11 + $0x620] ss:$16 sps:$4 sm:$0xff]  }
 0x131   :  { %v593_v59 = vadd.f32 %v571_v33, %v501_v43  ;;  %2259 = vmatprep.mubr.bf16.mxu1 %v4667_v45  ;;  %2219 = vmatmul.mubr.bf16.vlgmr.msra.gmra.mxu0 %v4663_v41  ;;  %v4010_v23 = vld [vmem:[#allocation11 + $0x424] ss:$16 sps:$4 sm:$0xff]   ;;  %v4014_v29 = vld [vmem:[#allocation11 + $0x400] ss:$16 sps:$4 sm:$0xff]   ;;  %vm600_vm7 = vcmp.gt.f32.partialorder %v4665_v42, 0.0  ;;  %vm602_vm8 = vcmp.gt.f32.partialorder %v4671_v54, 0.0 }
 0x132   :  { %v595_v61 = vadd.f32 %v579_v37, %v542_v50  ;;  %2260 = vmatmul.mubr.bf16.vlgmr.msra.gmra.mxu1 %v4669_v49  ;;  %2269 = vmatpush1.bf16.msra.mxu0 %v3972_v40  ;;  %v503_v0 = vpop.f32.mrf.mxu0  ;;  %v544_v2 = vpop.f32.mrf.mxu1  ;;  %v4013_v24 = vld [vmem:[#allocation11 + $0x624] ss:$16 sps:$4 sm:$0xff]   ;;  %v4017_v30 = vld [vmem:[#allocation11 + $0x600] ss:$16 sps:$4 sm:$0xff]  }
 0x133   :  { %v609_v1 = vmul.f32 0.01, %v593_v59  ;;  %2310 = vmatpush1.bf16.msra.mxu1 %v3975_v46  ;;  %2270 = vmatprep.subr.bf16.mxu0 %v3980_v47  ;;  %vm601_vm5 = vcmp.gt.f32.partialorder %v593_v59, 0.0  ;;  %v4016_v27 = vld [vmem:[#allocation11 + $0x404] ss:$16 sps:$4 sm:$0xff]  }
 0x134   :  { %v611_v3 = vmul.f32 0.01, %v595_v61  ;;  %2311 = vmatprep.subr.bf16.mxu1 %v3983_v55  ;;  %vm603_vm6 = vcmp.gt.f32.partialorder %v595_v61, 0.0  ;;  %v4019_v28 = vld [vmem:[#allocation11 + $0x604] ss:$16 sps:$4 sm:$0xff]  }
 0x135   :  { %v617_v5 = vsel %vm601_vm5, %v593_v59, %v609_v1  ;;  %v4022_v31 = vld [vmem:[#allocation11 + $0x5e4] ss:$16 sps:$4 sm:$0xff]   ;;  %v4020_v33 = vld [vmem:[#allocation11 + $0x5e0] ss:$16 sps:$4 sm:$0xff]  }
 0x136   :  { %2271 = vmatpush1.bf16.msra.mxu0 %v3978_v62  ;;  %v4678_v7 = vpack.c.bf16 %v617_v5, %v617_v5  ;;  %v619_v8 = vsel %vm603_vm6, %v595_v61, %v611_v3  ;;  %v4025_v32 = vld [vmem:[#allocation11 + $0x7e4] ss:$16 sps:$4 sm:$0xff]   ;;  %v4023_v34 = vld [vmem:[#allocation11 + $0x7e0] ss:$16 sps:$4 sm:$0xff]  }
 0x137   :  { %2312 = vmatpush1.bf16.msra.mxu1 %v3981_v63  ;;  %2272 = vmatprep.subr.bf16.mxu0 %v3986_v52  ;;  %v4680_v10 = vpack.c.bf16 %v619_v8, %v619_v8  ;;  %v4028_v35 = vld [vmem:[#allocation11 + $0x5c4] ss:$16 sps:$4 sm:$0xff]   ;;  %v4026_v37 = vld [vmem:[#allocation11 + $0x5c0] ss:$16 sps:$4 sm:$0xff]   ;;  %v608_v8 = vmul.f32 0.01, %v4665_v42 }
 0x138   :  { %2300 = vmatprep.mubr.bf16.mxu0 %v4678_v7  ;;  %2313 = vmatprep.subr.bf16.mxu1 %v3989_v4  ;;  %v4031_v36 = vld [vmem:[#allocation11 + $0x7c4] ss:$16 sps:$4 sm:$0xff]   ;;  %v4029_v39 = vld [vmem:[#allocation11 + $0x7c0] ss:$16 sps:$4 sm:$0xff]  }
 0x139   :  { %2341 = vmatprep.mubr.bf16.mxu1 %v4680_v10  ;;  %v4034_v40 = vld [vmem:[#allocation11 + $0x5a4] ss:$16 sps:$4 sm:$0xff]   ;;  %v4032_v44 = vld [vmem:[#allocation11 + $0x5a0] ss:$16 sps:$4 sm:$0xff]  }
 0x13a   :  { %2273 = vmatpush1.bf16.msra.mxu0 %v3984_v6  ;;  %v4037_v43 = vld [vmem:[#allocation11 + $0x7a4] ss:$16 sps:$4 sm:$0xff]   ;;  %v4035_v46 = vld [vmem:[#allocation11 + $0x7a0] ss:$16 sps:$4 sm:$0xff]  }
 0x13b   :  { %2314 = vmatpush1.bf16.msra.mxu1 %v3987_v9  ;;  %2274 = vmatprep.subr.bf16.mxu0 %v3992_v11  ;;  %v4040_v47 = vld [vmem:[#allocation11 + $0x584] ss:$16 sps:$4 sm:$0xff]   ;;  %v4038_v55 = vld [vmem:[#allocation11 + $0x580] ss:$16 sps:$4 sm:$0xff]   ;;  %v610_v11 = vmul.f32 0.01, %v4671_v54 }
 0x13c   :  { %2315 = vmatprep.subr.bf16.mxu1 %v3995_v12  ;;  %v4043_v50 = vld [vmem:[#allocation11 + $0x784] ss:$16 sps:$4 sm:$0xff]   ;;  %v4041_v57 = vld [vmem:[#allocation11 + $0x780] ss:$16 sps:$4 sm:$0xff]  }
 0x13d   :  { %v4046_v59 = vld [vmem:[#allocation11 + $0x564] ss:$16 sps:$4 sm:$0xff]   ;;  %v4044_v61 = vld [vmem:[#allocation11 + $0x560] ss:$16 sps:$4 sm:$0xff]  }
 0x13e   :  { %2275 = vmatpush1.bf16.msra.mxu0 %v3990_v13  ;;  %v4049_v51 = vld [vmem:[#allocation11 + $0x764] ss:$16 sps:$4 sm:$0xff]   ;;  %v4047_v62 = vld [vmem:[#allocation11 + $0x760] ss:$16 sps:$4 sm:$0xff]  }
 0x13f   :  { %2316 = vmatpush1.bf16.msra.mxu1 %v3993_v14  ;;  %2276 = vmatprep.subr.bf16.mxu0 %v3998_v15  ;;  %v4052_v63 = vld [vmem:[#allocation11 + $0x544] ss:$16 sps:$4 sm:$0xff]   ;;  %v4050_v1 = vld [vmem:[#allocation11 + $0x540] ss:$16 sps:$4 sm:$0xff]   ;;  %v4070_v14 = vld [vmem:[#allocation11 + $0xec] ss:$16 sps:$4 sm:$0xff]   ;;  %v616_v15 = vsel %vm600_vm7, %v4665_v42, %v608_v8 }
 0x140   :  { %2317 = vmatprep.subr.bf16.mxu1 %v4001_v16  ;;  %v4055_v0 = vld [vmem:[#allocation11 + $0x744] ss:$16 sps:$4 sm:$0xff]   ;;  %v4053_v52 = vld [vmem:[#allocation11 + $0x740] ss:$16 sps:$4 sm:$0xff]   ;;  %v4073_v16 = vld [vmem:[#allocation11 + $0x2ec] ss:$16 sps:$4 sm:$0xff]  }
 0x141   :  { %v4058_v2 = vld [vmem:[#allocation11 + $0x524] ss:$16 sps:$4 sm:$0xff]   ;;  %v4056_v4 = vld [vmem:[#allocation11 + $0x520] ss:$16 sps:$4 sm:$0xff]   ;;  %v4074_v42 = vld [vmem:[#allocation11 + $0xc8] ss:$16 sps:$4 sm:$0xff]  }
 0x142   :  { %2277 = vmatpush1.bf16.msra.mxu0 %v3996_v17  ;;  %v4061_v3 = vld [vmem:[#allocation11 + $0x724] ss:$16 sps:$4 sm:$0xff]   ;;  %v4059_v5 = vld [vmem:[#allocation11 + $0x720] ss:$16 sps:$4 sm:$0xff]   ;;  %v618_v17 = vsel %vm602_vm8, %v4671_v54, %v610_v11  ;;  %v4077_v54 = vld [vmem:[#allocation11 + $0x2c8] ss:$16 sps:$4 sm:$0xff]  }
 0x143   :  { %2318 = vmatpush1.bf16.msra.mxu1 %v3999_v18  ;;  %2278 = vmatprep.subr.bf16.mxu0 %v4004_v19  ;;  %v4064_v6 = vld [vmem:[#allocation11 + $0x504] ss:$16 sps:$4 sm:$0xff]   ;;  %v4062_v12 = vld [vmem:[#allocation11 + $0x500] ss:$16 sps:$4 sm:$0xff]   ;;  %v4068_v18 = vld [vmem:[#allocation11 + $0xe8] ss:$16 sps:$4 sm:$0xff]   ;;  %v4690_v19 = vpack.c.bf16 %v616_v15, %v616_v15 }
 0x144   :  { %2319 = vmatprep.subr.bf16.mxu1 %v4007_v20  ;;  %v4067_v9 = vld [vmem:[#allocation11 + $0x704] ss:$16 sps:$4 sm:$0xff]   ;;  %v4065_v13 = vld [vmem:[#allocation11 + $0x700] ss:$16 sps:$4 sm:$0xff]   ;;  %v4071_v20 = vld [vmem:[#allocation11 + $0x2e8] ss:$16 sps:$4 sm:$0xff]  }
 0x145   :  { %v4134_v8 = vld [vmem:[#allocation11 + $0x188] ss:$16 sps:$4 sm:$0xff]   ;;  %v4142_v11 = vld [vmem:[#allocation11 + $0x16c] ss:$16 sps:$4 sm:$0xff]  }
 0x146   :  { %2279 = vmatpush1.bf16.msra.mxu0 %v4002_v21  ;;  %v4692_v21 = vpack.c.bf16 %v618_v17, %v618_v17  ;;  %v4148_v15 = vld [vmem:[#allocation11 + $0x14c] ss:$16 sps:$4 sm:$0xff]   ;;  %v4146_v17 = vld [vmem:[#allocation11 + $0x148] ss:$16 sps:$4 sm:$0xff]  }
 0x147   :  { %2320 = vmatpush1.bf16.msra.mxu1 %v4005_v22  ;;  %2280 = vmatprep.subr.bf16.mxu0 %v4010_v23  ;;  %v4076_v22 = vld [vmem:[#allocation11 + $0xcc] ss:$16 sps:$4 sm:$0xff]  }
 0x148   :  { %2321 = vmatprep.subr.bf16.mxu1 %v4013_v24  ;;  %v4079_v23 = vld [vmem:[#allocation11 + $0x2cc] ss:$16 sps:$4 sm:$0xff]  }
 0x149   :  { %v4082_v24 = vld [vmem:[#allocation11 + $0xac] ss:$16 sps:$4 sm:$0xff]  }
 0x14a   :  { %2281 = vmatpush1.bf16.msra.mxu0 %v4008_v25  ;;  %v4085_v25 = vld [vmem:[#allocation11 + $0x2ac] ss:$16 sps:$4 sm:$0xff]  }
 0x14b   :  { %2322 = vmatpush1.bf16.msra.mxu1 %v4011_v26  ;;  %2282 = vmatprep.subr.bf16.mxu0 %v4016_v27  ;;  %v4080_v26 = vld [vmem:[#allocation11 + $0xa8] ss:$16 sps:$4 sm:$0xff]  }
 0x14c   :  { %2323 = vmatprep.subr.bf16.mxu1 %v4019_v28  ;;  %v4083_v27 = vld [vmem:[#allocation11 + $0x2a8] ss:$16 sps:$4 sm:$0xff]   ;;  %v4088_v28 = vld [vmem:[#allocation11 + $0x8c] ss:$16 sps:$4 sm:$0xff]  }
 0x14e   :  { %2283 = vmatpush1.bf16.msra.mxu0 %v4014_v29  ;;  %v4091_v29 = vld [vmem:[#allocation11 + $0x28c] ss:$16 sps:$4 sm:$0xff]  }
 0x14f   :  { %2324 = vmatpush1.bf16.msra.mxu1 %v4017_v30  ;;  %2284 = vmatprep.subr.bf16.mxu0 %v4022_v31  ;;  %v4086_v30 = vld [vmem:[#allocation11 + $0x88] ss:$16 sps:$4 sm:$0xff]   ;;  %v4094_v31 = vld [vmem:[#allocation11 + $0x6c] ss:$16 sps:$4 sm:$0xff]  }
 0x150   :  { %2325 = vmatprep.subr.bf16.mxu1 %v4025_v32  ;;  %v4097_v32 = vld [vmem:[#allocation11 + $0x26c] ss:$16 sps:$4 sm:$0xff]  }
 0x152   :  { %2285 = vmatpush2.bf16.msra.mxu0 %v4020_v33  ;;  %v4095_v33 = vld [vmem:[#allocation11 + $0x268] ss:$16 sps:$4 sm:$0xff]  }
 0x153   :  { %2326 = vmatpush2.bf16.msra.mxu1 %v4023_v34  ;;  %2286 = vmatprep.subr.bf16.mxu0 %v4028_v35  ;;  %v4100_v34 = vld [vmem:[#allocation11 + $0x4c] ss:$16 sps:$4 sm:$0xff]  }
 0x154   :  { %2327 = vmatprep.subr.bf16.mxu1 %v4031_v36  ;;  %v4103_v35 = vld [vmem:[#allocation11 + $0x24c] ss:$16 sps:$4 sm:$0xff]   ;;  %v4098_v36 = vld [vmem:[#allocation11 + $0x48] ss:$16 sps:$4 sm:$0xff]  }
 0x156   :  { %2287 = vmatpush2.bf16.msra.mxu0 %v4026_v37  ;;  %v4101_v37 = vld [vmem:[#allocation11 + $0x248] ss:$16 sps:$4 sm:$0xff]  }
 0x157   :  { %2328 = vmatpush2.bf16.msra.mxu1 %v4029_v39  ;;  %2288 = vmatprep.subr.bf16.mxu0 %v4034_v40  ;;  %v4106_v39 = vld [vmem:[#allocation11 + $0x2c] ss:$16 sps:$4 sm:$0xff]  }
 0x158   :  { %2329 = vmatprep.subr.bf16.mxu1 %v4037_v43  ;;  %v4109_v40 = vld [vmem:[#allocation11 + $0x22c] ss:$16 sps:$4 sm:$0xff]   ;;  %v4104_v43 = vld [vmem:[#allocation11 + $0x28] ss:$16 sps:$4 sm:$0xff]  }
 0x15a   :  { %2289 = vmatpush2.bf16.msra.mxu0 %v4032_v44  ;;  %v4107_v44 = vld [vmem:[#allocation11 + $0x228] ss:$16 sps:$4 sm:$0xff]  }
 0x15b   :  { %2330 = vmatpush2.bf16.msra.mxu1 %v4035_v46  ;;  %2290 = vmatprep.subr.bf16.mxu0 %v4040_v47  ;;  %v4112_v46 = vld [vmem:[#allocation11 + $0xc] ss:$16 sps:$4 sm:$0xff]  }
 0x15c   :  { %2331 = vmatprep.subr.bf16.mxu1 %v4043_v50  ;;  %v4115_v47 = vld [vmem:[#allocation11 + $0x20c] ss:$16 sps:$4 sm:$0xff]   ;;  %v4110_v50 = vld [vmem:[#allocation11 + $0x8] ss:$16 sps:$4 sm:$0xff]  }
 0x15e   :  { %2291 = vmatpush2.bf16.msra.mxu0 %v4038_v55  ;;  %v4113_v55 = vld [vmem:[#allocation11 + $0x208] ss:$16 sps:$4 sm:$0xff]  }
 0x15f   :  { %2332 = vmatpush2.bf16.msra.mxu1 %v4041_v57  ;;  %2292 = vmatprep.subr.bf16.mxu0 %v4046_v59  ;;  %v4118_v57 = vld [vmem:[#allocation11 + $0x1ec] ss:$16 sps:$4 sm:$0xff]  }
 0x160   :  { %2333 = vmatprep.subr.bf16.mxu1 %v4049_v51  ;;  %v4121_v59 = vld [vmem:[#allocation11 + $0x3ec] ss:$16 sps:$4 sm:$0xff]   ;;  %v4116_v51 = vld [vmem:[#allocation11 + $0x1e8] ss:$16 sps:$4 sm:$0xff]  }
 0x162   :  { %2293 = vmatpush2.bf16.msra.mxu0 %v4044_v61  ;;  %v4119_v61 = vld [vmem:[#allocation11 + $0x3e8] ss:$16 sps:$4 sm:$0xff]  }
 0x163   :  { %2334 = vmatpush2.bf16.msra.mxu1 %v4047_v62  ;;  %2294 = vmatprep.subr.bf16.mxu0 %v4052_v63  ;;  %v4124_v62 = vld [vmem:[#allocation11 + $0x1cc] ss:$16 sps:$4 sm:$0xff]  }
 0x164   :  { %2335 = vmatprep.subr.bf16.mxu1 %v4055_v0  ;;  %v4127_v63 = vld [vmem:[#allocation11 + $0x3cc] ss:$16 sps:$4 sm:$0xff]   ;;  %v4122_v0 = vld [vmem:[#allocation11 + $0x1c8] ss:$16 sps:$4 sm:$0xff]  }
 0x166   :  { %2295 = vmatpush2.bf16.msra.mxu0 %v4050_v1  ;;  %v4125_v1 = vld [vmem:[#allocation11 + $0x3c8] ss:$16 sps:$4 sm:$0xff]  }
 0x167   :  { %2336 = vmatpush2.bf16.msra.mxu1 %v4053_v52  ;;  %2296 = vmatprep.subr.bf16.mxu0 %v4058_v2  ;;  %v4130_v52 = vld [vmem:[#allocation11 + $0x1ac] ss:$16 sps:$4 sm:$0xff]  }
 0x168   :  { %2337 = vmatprep.subr.bf16.mxu1 %v4061_v3  ;;  %v4133_v2 = vld [vmem:[#allocation11 + $0x3ac] ss:$16 sps:$4 sm:$0xff]   ;;  %v4128_v3 = vld [vmem:[#allocation11 + $0x1a8] ss:$16 sps:$4 sm:$0xff]  }
 0x16a   :  { %2297 = vmatpush2.bf16.msra.mxu0 %v4056_v4  ;;  %v4131_v4 = vld [vmem:[#allocation11 + $0x3a8] ss:$16 sps:$4 sm:$0xff]  }
 0x16b   :  { %2338 = vmatpush2.bf16.msra.mxu1 %v4059_v5  ;;  %2298 = vmatprep.subr.bf16.mxu0 %v4064_v6  ;;  %v4136_v5 = vld [vmem:[#allocation11 + $0x18c] ss:$16 sps:$4 sm:$0xff]  }
 0x16c   :  { %2339 = vmatprep.subr.bf16.mxu1 %v4067_v9  ;;  %v4139_v6 = vld [vmem:[#allocation11 + $0x38c] ss:$16 sps:$4 sm:$0xff]   ;;  %v4137_v9 = vld [vmem:[#allocation11 + $0x388] ss:$16 sps:$4 sm:$0xff]  }
 0x16e   :  { %2299 = vmatpush2.bf16.msra.mxu0 %v4062_v12  ;;  %v4145_v12 = vld [vmem:[#allocation11 + $0x36c] ss:$16 sps:$4 sm:$0xff]  }
 0x16f   :  { %2340 = vmatpush2.bf16.msra.mxu1 %v4065_v13  ;;  %2350 = vmatprep.subr.bf16.mxu0 %v4070_v14  ;;  %v4140_v13 = vld [vmem:[#allocation11 + $0x168] ss:$16 sps:$4 sm:$0xff]  }
 0x170   :  { %2391 = vmatprep.subr.bf16.mxu1 %v4073_v16  ;;  %v4143_v14 = vld [vmem:[#allocation11 + $0x368] ss:$16 sps:$4 sm:$0xff]   ;;  %v4151_v16 = vld [vmem:[#allocation11 + $0x34c] ss:$16 sps:$4 sm:$0xff]  }
 0x171   :  { %2301 = vmatmul.mubr.bf16.vlgmr.msra.gmra.mxu0 %v4690_v19 }
 0x172   :  { %2342 = vmatmul.mubr.bf16.vlgmr.msra.gmra.mxu1 %v4692_v21  ;;  %2351 = vmatpush1.bf16.msra.mxu0 %v4068_v18  ;;  %v4149_v18 = vld [vmem:[#allocation11 + $0x348] ss:$16 sps:$4 sm:$0xff]  }
 0x173   :  { %2382 = vmatprep.mubr.bf16.mxu0 %v4661_v38  ;;  %2392 = vmatpush1.bf16.msra.mxu1 %v4071_v20  ;;  %v4089_v38 = vld [vmem:[#allocation11 + $0x288] ss:$16 sps:$4 sm:$0xff]   ;;  %v4154_v20 = vld [vmem:[#allocation11 + $0x12c] ss:$16 sps:$4 sm:$0xff]  }
 0x174   :  { %2423 = vmatprep.mubr.bf16.mxu1 %v4667_v45  ;;  %2352 = vmatprep.subr.bf16.mxu0 %v4076_v22  ;;  %v4092_v45 = vld [vmem:[#allocation11 + $0x68] ss:$16 sps:$4 sm:$0xff]   ;;  %v4157_v22 = vld [vmem:[#allocation11 + $0x32c] ss:$16 sps:$4 sm:$0xff]  }
 0x175   :  { %2393 = vmatprep.subr.bf16.mxu1 %v4079_v23  ;;  %v4152_v23 = vld [vmem:[#allocation11 + $0x128] ss:$16 sps:$4 sm:$0xff]  }
 0x176   :  { %2353 = vmatpush1.bf16.msra.mxu0 %v4074_v42  ;;  %v4155_v42 = vld [vmem:[#allocation11 + $0x328] ss:$16 sps:$4 sm:$0xff]  }
 0x177   :  { %2394 = vmatpush1.bf16.msra.mxu1 %v4077_v54  ;;  %2354 = vmatprep.subr.bf16.mxu0 %v4082_v24  ;;  %v4160_v54 = vld [vmem:[#allocation11 + $0x10c] ss:$16 sps:$4 sm:$0xff]  }
 0x178   :  { %2395 = vmatprep.subr.bf16.mxu1 %v4085_v25  ;;  %v4163_v24 = vld [vmem:[#allocation11 + $0x30c] ss:$16 sps:$4 sm:$0xff]   ;;  %v4158_v25 = vld [vmem:[#allocation11 + $0x108] ss:$16 sps:$4 sm:$0xff]  }
 0x17a   :  { %2355 = vmatpush1.bf16.msra.mxu0 %v4080_v26  ;;  %v4161_v26 = vld [vmem:[#allocation11 + $0x308] ss:$16 sps:$4 sm:$0xff]  }
 0x17b   :  { %2396 = vmatpush1.bf16.msra.mxu1 %v4083_v27  ;;  %2356 = vmatprep.subr.bf16.mxu0 %v4088_v28  ;;  %v4166_v27 = vld [vmem:[#allocation11 + $0x4ec] ss:$16 sps:$4 sm:$0xff]  }
 0x17c   :  { %2397 = vmatprep.subr.bf16.mxu1 %v4091_v29  ;;  %v4169_v28 = vld [vmem:[#allocation11 + $0x6ec] ss:$16 sps:$4 sm:$0xff]   ;;  %v4164_v29 = vld [vmem:[#allocation11 + $0x4e8] ss:$16 sps:$4 sm:$0xff]  }
 0x17e   :  { %2357 = vmatpush1.bf16.msra.mxu0 %v4086_v30  ;;  %v4167_v30 = vld [vmem:[#allocation11 + $0x6e8] ss:$16 sps:$4 sm:$0xff]  }
 0x17f   :  { %2398 = vmatpush1.bf16.msra.mxu1 %v4089_v38  ;;  %2358 = vmatprep.subr.bf16.mxu0 %v4094_v31  ;;  %v4172_v38 = vld [vmem:[#allocation11 + $0x4cc] ss:$16 sps:$4 sm:$0xff]  }
 0x180   :  { %2399 = vmatprep.subr.bf16.mxu1 %v4097_v32  ;;  %v4175_v31 = vld [vmem:[#allocation11 + $0x6cc] ss:$16 sps:$4 sm:$0xff]   ;;  %v4170_v32 = vld [vmem:[#allocation11 + $0x4c8] ss:$16 sps:$4 sm:$0xff]  }
 0x182   :  { %2359 = vmatpush1.bf16.msra.mxu0 %v4092_v45  ;;  %v4173_v45 = vld [vmem:[#allocation11 + $0x6c8] ss:$16 sps:$4 sm:$0xff]  }
 0x183   :  { %2400 = vmatpush1.bf16.msra.mxu1 %v4095_v33  ;;  %2360 = vmatprep.subr.bf16.mxu0 %v4100_v34  ;;  %v4178_v33 = vld [vmem:[#allocation11 + $0x4ac] ss:$16 sps:$4 sm:$0xff]  }
 0x184   :  { %2401 = vmatprep.subr.bf16.mxu1 %v4103_v35  ;;  %v4181_v34 = vld [vmem:[#allocation11 + $0x6ac] ss:$16 sps:$4 sm:$0xff]   ;;  %v4176_v35 = vld [vmem:[#allocation11 + $0x4a8] ss:$16 sps:$4 sm:$0xff]  }
 0x186   :  { %2361 = vmatpush1.bf16.msra.mxu0 %v4098_v36  ;;  %v4184_v36 = vld [vmem:[#allocation11 + $0x48c] ss:$16 sps:$4 sm:$0xff]  }
 0x187   :  { %2402 = vmatpush1.bf16.msra.mxu1 %v4101_v37  ;;  %2362 = vmatprep.subr.bf16.mxu0 %v4106_v39  ;;  %v4182_v37 = vld [vmem:[#allocation11 + $0x488] ss:$16 sps:$4 sm:$0xff]   ;;  %v4190_v39 = vld [vmem:[#allocation11 + $0x46c] ss:$16 sps:$4 sm:$0xff]  }
 0x188   :  { %2403 = vmatprep.subr.bf16.mxu1 %v4109_v40  ;;  %v4193_v40 = vld [vmem:[#allocation11 + $0x66c] ss:$16 sps:$4 sm:$0xff]  }
 0x18a   :  { %2363 = vmatpush1.bf16.msra.mxu0 %v4104_v43  ;;  %v4191_v43 = vld [vmem:[#allocation11 + $0x668] ss:$16 sps:$4 sm:$0xff]  }
 0x18b   :  { %2404 = vmatpush1.bf16.msra.mxu1 %v4107_v44  ;;  %2364 = vmatprep.subr.bf16.mxu0 %v4112_v46  ;;  %v4196_v44 = vld [vmem:[#allocation11 + $0x44c] ss:$16 sps:$4 sm:$0xff]  }
 0x18c   :  { %2405 = vmatprep.subr.bf16.mxu1 %v4115_v47  ;;  %v4199_v46 = vld [vmem:[#allocation11 + $0x64c] ss:$16 sps:$4 sm:$0xff]   ;;  %v4194_v47 = vld [vmem:[#allocation11 + $0x448] ss:$16 sps:$4 sm:$0xff]  }
 0x18e   :  { %2365 = vmatpush1.bf16.msra.mxu0 %v4110_v50  ;;  %v4197_v50 = vld [vmem:[#allocation11 + $0x648] ss:$16 sps:$4 sm:$0xff]  }
 0x18f   :  { %2406 = vmatpush1.bf16.msra.mxu1 %v4113_v55  ;;  %2366 = vmatprep.subr.bf16.mxu0 %v4118_v57  ;;  %v4202_v55 = vld [vmem:[#allocation11 + $0x42c] ss:$16 sps:$4 sm:$0xff]  }
 0x190   :  { %2407 = vmatprep.subr.bf16.mxu1 %v4121_v59  ;;  %v4205_v57 = vld [vmem:[#allocation11 + $0x62c] ss:$16 sps:$4 sm:$0xff]   ;;  %v4200_v59 = vld [vmem:[#allocation11 + $0x428] ss:$16 sps:$4 sm:$0xff]  }
 0x192   :  { %2367 = vmatpush2.bf16.msra.mxu0 %v4116_v51  ;;  %v4203_v51 = vld [vmem:[#allocation11 + $0x628] ss:$16 sps:$4 sm:$0xff]  }
 0x193   :  { %2408 = vmatpush2.bf16.msra.mxu1 %v4119_v61  ;;  %2368 = vmatprep.subr.bf16.mxu0 %v4124_v62  ;;  %v4208_v61 = vld [vmem:[#allocation11 + $0x40c] ss:$16 sps:$4 sm:$0xff]  }
 0x194   :  { %2409 = vmatprep.subr.bf16.mxu1 %v4127_v63  ;;  %v4211_v62 = vld [vmem:[#allocation11 + $0x60c] ss:$16 sps:$4 sm:$0xff]   ;;  %v4206_v63 = vld [vmem:[#allocation11 + $0x408] ss:$16 sps:$4 sm:$0xff]  }
 0x196   :  { %2369 = vmatpush2.bf16.msra.mxu0 %v4122_v0  ;;  %v4209_v0 = vld [vmem:[#allocation11 + $0x608] ss:$16 sps:$4 sm:$0xff]  }
 0x197   :  { %2410 = vmatpush2.bf16.msra.mxu1 %v4125_v1  ;;  %2370 = vmatprep.subr.bf16.mxu0 %v4130_v52  ;;  %v4214_v1 = vld [vmem:[#allocation11 + $0x5ec] ss:$16 sps:$4 sm:$0xff]  }
 0x198   :  { %2411 = vmatprep.subr.bf16.mxu1 %v4133_v2  ;;  %v4217_v52 = vld [vmem:[#allocation11 + $0x7ec] ss:$16 sps:$4 sm:$0xff]   ;;  %v4212_v2 = vld [vmem:[#allocation11 + $0x5e8] ss:$16 sps:$4 sm:$0xff]  }
 0x19a   :  { %2371 = vmatpush2.bf16.msra.mxu0 %v4128_v3  ;;  %v4215_v3 = vld [vmem:[#allocation11 + $0x7e8] ss:$16 sps:$4 sm:$0xff]  }
 0x19b   :  { %2412 = vmatpush2.bf16.msra.mxu1 %v4131_v4  ;;  %2372 = vmatprep.subr.bf16.mxu0 %v4136_v5  ;;  %v4220_v4 = vld [vmem:[#allocation11 + $0x5cc] ss:$16 sps:$4 sm:$0xff]  }
 0x19c   :  { %2413 = vmatprep.subr.bf16.mxu1 %v4139_v6  ;;  %v4223_v5 = vld [vmem:[#allocation11 + $0x7cc] ss:$16 sps:$4 sm:$0xff]   ;;  %v4218_v6 = vld [vmem:[#allocation11 + $0x5c8] ss:$16 sps:$4 sm:$0xff]  }
 0x19e   :  { %2373 = vmatpush2.bf16.msra.mxu0 %v4134_v8  ;;  %v4221_v8 = vld [vmem:[#allocation11 + $0x7c8] ss:$16 sps:$4 sm:$0xff]  }
 0x19f   :  { %2414 = vmatpush2.bf16.msra.mxu1 %v4137_v9  ;;  %2374 = vmatprep.subr.bf16.mxu0 %v4142_v11  ;;  %v4226_v9 = vld [vmem:[#allocation11 + $0x5ac] ss:$16 sps:$4 sm:$0xff]  }
 0x1a0   :  { %2415 = vmatprep.subr.bf16.mxu1 %v4145_v12  ;;  %v4229_v11 = vld [vmem:[#allocation11 + $0x7ac] ss:$16 sps:$4 sm:$0xff]   ;;  %v4224_v12 = vld [vmem:[#allocation11 + $0x5a8] ss:$16 sps:$4 sm:$0xff]  }
 0x1a2   :  { %2375 = vmatpush2.bf16.msra.mxu0 %v4140_v13  ;;  %v4227_v13 = vld [vmem:[#allocation11 + $0x7a8] ss:$16 sps:$4 sm:$0xff]  }
 0x1a3   :  { %2416 = vmatpush2.bf16.msra.mxu1 %v4143_v14  ;;  %2376 = vmatprep.subr.bf16.mxu0 %v4148_v15  ;;  %v4232_v14 = vld [vmem:[#allocation11 + $0x58c] ss:$16 sps:$4 sm:$0xff]  }
 0x1a4   :  { %2417 = vmatprep.subr.bf16.mxu1 %v4151_v16  ;;  %v4235_v15 = vld [vmem:[#allocation11 + $0x78c] ss:$16 sps:$4 sm:$0xff]   ;;  %v4230_v16 = vld [vmem:[#allocation11 + $0x588] ss:$16 sps:$4 sm:$0xff]  }
 0x1a6   :  { %2377 = vmatpush2.bf16.msra.mxu0 %v4146_v17  ;;  %v4233_v17 = vld [vmem:[#allocation11 + $0x788] ss:$16 sps:$4 sm:$0xff]  }
 0x1a7   :  { %2418 = vmatpush2.bf16.msra.mxu1 %v4149_v18  ;;  %2378 = vmatprep.subr.bf16.mxu0 %v4154_v20  ;;  %v4238_v18 = vld [vmem:[#allocation11 + $0x56c] ss:$16 sps:$4 sm:$0xff]  }
 0x1a8   :  { %2419 = vmatprep.subr.bf16.mxu1 %v4157_v22  ;;  %v4241_v20 = vld [vmem:[#allocation11 + $0x76c] ss:$16 sps:$4 sm:$0xff]   ;;  %v4236_v22 = vld [vmem:[#allocation11 + $0x568] ss:$16 sps:$4 sm:$0xff]  }
 0x1aa   :  { %2379 = vmatpush2.bf16.msra.mxu0 %v4152_v23  ;;  %v4239_v23 = vld [vmem:[#allocation11 + $0x768] ss:$16 sps:$4 sm:$0xff]  }
 0x1ab   :  { %2420 = vmatpush2.bf16.msra.mxu1 %v4155_v42  ;;  %2380 = vmatprep.subr.bf16.mxu0 %v4160_v54  ;;  %v4244_v42 = vld [vmem:[#allocation11 + $0x54c] ss:$16 sps:$4 sm:$0xff]  }
 0x1ac   :  { %2421 = vmatprep.subr.bf16.mxu1 %v4163_v24  ;;  %v4247_v54 = vld [vmem:[#allocation11 + $0x74c] ss:$16 sps:$4 sm:$0xff]   ;;  %v4242_v24 = vld [vmem:[#allocation11 + $0x548] ss:$16 sps:$4 sm:$0xff]  }
 0x1ae   :  { %2381 = vmatpush2.bf16.msra.mxu0 %v4158_v25  ;;  %v4245_v25 = vld [vmem:[#allocation11 + $0x748] ss:$16 sps:$4 sm:$0xff]  }
 0x1af   :  { %2422 = vmatpush2.bf16.msra.mxu1 %v4161_v26  ;;  %2432 = vmatprep.subr.bf16.mxu0 %v4166_v27  ;;  %v4250_v26 = vld [vmem:[#allocation11 + $0x52c] ss:$16 sps:$4 sm:$0xff]  }
 0x1b0   :  { %2473 = vmatprep.subr.bf16.mxu1 %v4169_v28  ;;  %v4253_v27 = vld [vmem:[#allocation11 + $0x72c] ss:$16 sps:$4 sm:$0xff]   ;;  %v4248_v28 = vld [vmem:[#allocation11 + $0x528] ss:$16 sps:$4 sm:$0xff]  }
 0x1b1   :  { %2383 = vmatmul.mubr.bf16.vlgmr.msra.gmra.mxu0 %v4663_v41  ;;  %v4179_v41 = vld [vmem:[#allocation11 + $0x6a8] ss:$16 sps:$4 sm:$0xff]  }
 0x1b2   :  { %2424 = vmatmul.mubr.bf16.vlgmr.msra.gmra.mxu1 %v4669_v49  ;;  %2433 = vmatpush1.bf16.msra.mxu0 %v4164_v29  ;;  %v4187_v49 = vld [vmem:[#allocation11 + $0x68c] ss:$16 sps:$4 sm:$0xff]   ;;  %v4251_v29 = vld [vmem:[#allocation11 + $0x728] ss:$16 sps:$4 sm:$0xff]  }
 0x1b3   :  { %2464 = vmatprep.mubr.bf16.mxu0 %v4678_v7  ;;  %2474 = vmatpush1.bf16.msra.mxu1 %v4167_v30  ;;  %v4185_v7 = vld [vmem:[#allocation11 + $0x688] ss:$16 sps:$4 sm:$0xff]   ;;  %v4256_v30 = vld [vmem:[#allocation11 + $0x50c] ss:$16 sps:$4 sm:$0xff]  }
 0x1b4   :  { %2505 = vmatprep.mubr.bf16.mxu1 %v4680_v10  ;;  %2434 = vmatprep.subr.bf16.mxu0 %v4172_v38  ;;  %v4188_v10 = vld [vmem:[#allocation11 + $0x468] ss:$16 sps:$4 sm:$0xff]   ;;  %v4259_v38 = vld [vmem:[#allocation11 + $0x70c] ss:$16 sps:$4 sm:$0xff]  }
 0x1b5   :  { %2475 = vmatprep.subr.bf16.mxu1 %v4175_v31  ;;  %v4254_v31 = vld [vmem:[#allocation11 + $0x508] ss:$16 sps:$4 sm:$0xff]  }
 0x1b6   :  { %2435 = vmatpush1.bf16.msra.mxu0 %v4170_v32  ;;  %v4257_v32 = vld [vmem:[#allocation11 + $0x708] ss:$16 sps:$4 sm:$0xff]  }
 0x1b7   :  { %2476 = vmatpush1.bf16.msra.mxu1 %v4173_v45  ;;  %2436 = vmatprep.subr.bf16.mxu0 %v4178_v33  ;;  %v4705_v45 = vld [vmem:[%s4764_s5] sm:$0xf] }
 0x1b8   :  { %2477 = vmatprep.subr.bf16.mxu1 %v4181_v34  ;;  %v889_v33 = vrot.slane %v4705_v45, %v4643_v53  ;;  %v893_v34 = vrot.slane %v4705_v45, %v4649_v58 }
 0x1ba   :  { %2437 = vmatpush1.bf16.msra.mxu0 %v4176_v35 }
 0x1bb   :  { %2478 = vmatpush1.bf16.msra.mxu1 %v4179_v41  ;;  %2438 = vmatprep.subr.bf16.mxu0 %v4184_v36 }
 0x1bc   :  { %2479 = vmatprep.subr.bf16.mxu1 %v4187_v49 }
 0x1be   :  { %2439 = vmatpush1.bf16.msra.mxu0 %v4182_v37 }
 0x1bf   :  { %2480 = vmatpush1.bf16.msra.mxu1 %v4185_v7  ;;  %2440 = vmatprep.subr.bf16.mxu0 %v4190_v39 }
 0x1c0   :  { %2481 = vmatprep.subr.bf16.mxu1 %v4193_v40 }
 0x1c2   :  { %2441 = vmatpush1.bf16.msra.mxu0 %v4188_v10 }
 0x1c3   :  { %2482 = vmatpush1.bf16.msra.mxu1 %v4191_v43  ;;  %2442 = vmatprep.subr.bf16.mxu0 %v4196_v44 }
 0x1c4   :  { %2483 = vmatprep.subr.bf16.mxu1 %v4199_v46 }
 0x1c6   :  { %2443 = vmatpush1.bf16.msra.mxu0 %v4194_v47  ;;  %v4260_v47 = vld [vmem:[#allocation12 + $0xa8] ss:$12 sps:$4 sm:$0xff]  }
 0x1c7   :  { %2484 = vmatpush1.bf16.msra.mxu1 %v4197_v50  ;;  %2444 = vmatprep.subr.bf16.mxu0 %v4202_v55  ;;  %v4262_v50 = vld [vmem:[#allocation12 + $0xac] ss:$12 sps:$4 sm:$0xff]   ;;  %v4263_v55 = vld [vmem:[#allocation12 + $0x228] ss:$12 sps:$4 sm:$0xff]  }
 0x1c8   :  { %2485 = vmatprep.subr.bf16.mxu1 %v4205_v57  ;;  %v4268_v57 = vld [vmem:[#allocation12 + $0x94] ss:$12 sps:$4 sm:$0xff]  }
 0x1ca   :  { %2445 = vmatpush1.bf16.msra.mxu0 %v4200_v59  ;;  %v4266_v59 = vld [vmem:[#allocation12 + $0x90] ss:$12 sps:$4 sm:$0xff]  }
 0x1cb   :  { %2486 = vmatpush1.bf16.msra.mxu1 %v4203_v51  ;;  %2446 = vmatprep.subr.bf16.mxu0 %v4208_v61  ;;  %v4269_v51 = vld [vmem:[#allocation12 + $0x210] ss:$12 sps:$4 sm:$0xff]  }
 0x1cc   :  { %2487 = vmatprep.subr.bf16.mxu1 %v4211_v62  ;;  %v4274_v61 = vld [vmem:[#allocation12 + $0x7c] ss:$12 sps:$4 sm:$0xff]  }
 0x1cd   :  { %v4277_v62 = vld [vmem:[#allocation12 + $0x1fc] ss:$12 sps:$4 sm:$0xff]  }
 0x1ce   :  { %2447 = vmatpush1.bf16.msra.mxu0 %v4206_v63  ;;  %v4272_v63 = vld [vmem:[#allocation12 + $0x78] ss:$12 sps:$4 sm:$0xff]  }
 0x1cf   :  { %2488 = vmatpush1.bf16.msra.mxu1 %v4209_v0  ;;  %2448 = vmatprep.subr.bf16.mxu0 %v4214_v1  ;;  %v4275_v0 = vld [vmem:[#allocation12 + $0x1f8] ss:$12 sps:$4 sm:$0xff]  }
 0x1d0   :  { %2489 = vmatprep.subr.bf16.mxu1 %v4217_v52  ;;  %v4280_v1 = vld [vmem:[#allocation12 + $0x64] ss:$12 sps:$4 sm:$0xff]  }
 0x1d1   :  { %v4283_v52 = vld [vmem:[#allocation12 + $0x1e4] ss:$12 sps:$4 sm:$0xff]  }
 0x1d2   :  { %2449 = vmatpush2.bf16.msra.mxu0 %v4212_v2  ;;  %v4278_v2 = vld [vmem:[#allocation12 + $0x60] ss:$12 sps:$4 sm:$0xff]  }
 0x1d3   :  { %2490 = vmatpush2.bf16.msra.mxu1 %v4215_v3  ;;  %2450 = vmatprep.subr.bf16.mxu0 %v4220_v4  ;;  %v4281_v3 = vld [vmem:[#allocation12 + $0x1e0] ss:$12 sps:$4 sm:$0xff]  }
 0x1d4   :  { %2491 = vmatprep.subr.bf16.mxu1 %v4223_v5  ;;  %v4286_v4 = vld [vmem:[#allocation12 + $0x4c] ss:$12 sps:$4 sm:$0xff]  }
 0x1d5   :  { %v4289_v5 = vld [vmem:[#allocation12 + $0x1cc] ss:$12 sps:$4 sm:$0xff]  }
 0x1d6   :  { %2451 = vmatpush2.bf16.msra.mxu0 %v4218_v6  ;;  %v4284_v6 = vld [vmem:[#allocation12 + $0x48] ss:$12 sps:$4 sm:$0xff]  }
 0x1d7   :  { %2492 = vmatpush2.bf16.msra.mxu1 %v4221_v8  ;;  %2452 = vmatprep.subr.bf16.mxu0 %v4226_v9  ;;  %v4287_v8 = vld [vmem:[#allocation12 + $0x1c8] ss:$12 sps:$4 sm:$0xff]  }
 0x1d8   :  { %2493 = vmatprep.subr.bf16.mxu1 %v4229_v11  ;;  %v4292_v9 = vld [vmem:[#allocation12 + $0x34] ss:$12 sps:$4 sm:$0xff]  }
 0x1d9   :  { %v4295_v11 = vld [vmem:[#allocation12 + $0x1b4] ss:$12 sps:$4 sm:$0xff]  }
 0x1da   :  { %2453 = vmatpush2.bf16.msra.mxu0 %v4224_v12  ;;  %v4290_v12 = vld [vmem:[#allocation12 + $0x30] ss:$12 sps:$4 sm:$0xff]  }
 0x1db   :  { %2494 = vmatpush2.bf16.msra.mxu1 %v4227_v13  ;;  %2454 = vmatprep.subr.bf16.mxu0 %v4232_v14  ;;  %v4293_v13 = vld [vmem:[#allocation12 + $0x1b0] ss:$12 sps:$4 sm:$0xff]  }
 0x1dc   :  { %2495 = vmatprep.subr.bf16.mxu1 %v4235_v15  ;;  %v4298_v14 = vld [vmem:[#allocation12 + $0x1c] ss:$12 sps:$4 sm:$0xff]  }
 0x1dd   :  { %v4301_v15 = vld [vmem:[#allocation12 + $0x19c] ss:$12 sps:$4 sm:$0xff]  }
 0x1de   :  { %2455 = vmatpush2.bf16.msra.mxu0 %v4230_v16  ;;  %v4296_v16 = vld [vmem:[#allocation12 + $0x18] ss:$12 sps:$4 sm:$0xff]  }
 0x1df   :  { %2496 = vmatpush2.bf16.msra.mxu1 %v4233_v17  ;;  %2456 = vmatprep.subr.bf16.mxu0 %v4238_v18  ;;  %v4299_v17 = vld [vmem:[#allocation12 + $0x198] ss:$12 sps:$4 sm:$0xff]  }
 0x1e0   :  { %2497 = vmatprep.subr.bf16.mxu1 %v4241_v20  ;;  %v4304_v18 = vld [vmem:[#allocation12 + $0x4] ss:$12 sps:$4 sm:$0xff]  }
 0x1e1   :  { %v4307_v20 = vld [vmem:[#allocation12 + $0x184] ss:$12 sps:$4 sm:$0xff]  }
 0x1e2   :  { %2457 = vmatpush2.bf16.msra.mxu0 %v4236_v22  ;;  %v4302_v22 = vld [vmem:[#allocation12] ss:$12 sps:$4 sm:$0xff]  }
 0x1e3   :  { %2498 = vmatpush2.bf16.msra.mxu1 %v4239_v23  ;;  %2458 = vmatprep.subr.bf16.mxu0 %v4244_v42  ;;  %v4305_v23 = vld [vmem:[#allocation12 + $0x180] ss:$12 sps:$4 sm:$0xff]  }
 0x1e4   :  { %2499 = vmatprep.subr.bf16.mxu1 %v4247_v54  ;;  %v4310_v42 = vld [vmem:[#allocation12 + $0x16c] ss:$12 sps:$4 sm:$0xff]  }
 0x1e5   :  { %v4313_v54 = vld [vmem:[#allocation12 + $0x2ec] ss:$12 sps:$4 sm:$0xff]  }
 0x1e6   :  { %2459 = vmatpush2.bf16.msra.mxu0 %v4242_v24  ;;  %v4308_v24 = vld [vmem:[#allocation12 + $0x168] ss:$12 sps:$4 sm:$0xff]  }
 0x1e7   :  { %2500 = vmatpush2.bf16.msra.mxu1 %v4245_v25  ;;  %2460 = vmatprep.subr.bf16.mxu0 %v4250_v26  ;;  %v4311_v25 = vld [vmem:[#allocation12 + $0x2e8] ss:$12 sps:$4 sm:$0xff]  }
 0x1e8   :  { %2501 = vmatprep.subr.bf16.mxu1 %v4253_v27  ;;  %v4316_v26 = vld [vmem:[#allocation12 + $0x154] ss:$12 sps:$4 sm:$0xff]  }
 0x1e9   :  { %v4319_v27 = vld [vmem:[#allocation12 + $0x2d4] ss:$12 sps:$4 sm:$0xff]  }
 0x1ea   :  { %2461 = vmatpush2.bf16.msra.mxu0 %v4248_v28  ;;  %v4314_v28 = vld [vmem:[#allocation12 + $0x150] ss:$12 sps:$4 sm:$0xff]  }
 0x1eb   :  { %2502 = vmatpush2.bf16.msra.mxu1 %v4251_v29  ;;  %2462 = vmatprep.subr.bf16.mxu0 %v4256_v30  ;;  %v4317_v29 = vld [vmem:[#allocation12 + $0x2d0] ss:$12 sps:$4 sm:$0xff]  }
 0x1ec   :  { %2503 = vmatprep.subr.bf16.mxu1 %v4259_v38  ;;  %v4322_v30 = vld [vmem:[#allocation12 + $0x13c] ss:$12 sps:$4 sm:$0xff]  }
 0x1ed   :  { %v4325_v38 = vld [vmem:[#allocation12 + $0x2bc] ss:$12 sps:$4 sm:$0xff]  }
 0x1ee   :  { %2463 = vmatpush2.bf16.msra.mxu0 %v4254_v31  ;;  %v4320_v31 = vld [vmem:[#allocation12 + $0x138] ss:$12 sps:$4 sm:$0xff]  }
 0x1ef   :  { %2504 = vmatpush2.bf16.msra.mxu1 %v4257_v32  ;;  %3233 = vmatprep.subr.bf16.mxu0 %v4262_v50  ;;  %v4323_v32 = vld [vmem:[#allocation12 + $0x2b8] ss:$12 sps:$4 sm:$0xff]  }
 0x1f1   :  { %2465 = vmatmul.mubr.bf16.vlgmr.msra.gmra.mxu0 %v4690_v19  ;;  %v2220_v35 = vpop.f32.mrf.mxu0  ;;  %v4265_v19 = vld [vmem:[#allocation12 + $0x22c] ss:$12 sps:$4 sm:$0xff]  }
 0x1f2   :  { %2506 = vmatmul.mubr.bf16.vlgmr.msra.gmra.mxu1 %v4692_v21  ;;  %v2221_v41 = vadd.f32 %v2220_v35, %v889_v33  ;;  %v2261_v36 = vpop.f32.mrf.mxu1  ;;  %v4271_v21 = vld [vmem:[#allocation12 + $0x214] ss:$12 sps:$4 sm:$0xff]   ;;  %3274 = vmatprep.subr.bf16.mxu1 %v4265_v19  ;;  %v4334_v19 = vld [vmem:[#allocation12 + $0x10c] ss:$12 sps:$4 sm:$0xff]  }
 0x1f3   :  { %v2222_v49 = vpop.f32.mrf.mxu0  ;;  %3234 = vmatpush1.bf16.msra.mxu0 %v4260_v47  ;;  %3275 = vmatpush1.bf16.msra.mxu1 %v4263_v55 }
 0x1f4   :  { %v4713_v37 = vadd.f32 %v2261_v36, %v2221_v41  ;;  %v2223_v7 = vadd.f32 %v2222_v49, %v893_v34  ;;  %v2263_v39 = vpop.f32.mrf.mxu1  ;;  %3235 = vmatprep.subr.bf16.mxu0 %v4268_v57  ;;  %3276 = vmatprep.subr.bf16.mxu1 %v4271_v21  ;;  %v4328_v36 = vld [vmem:[#allocation12 + $0x124] ss:$12 sps:$4 sm:$0xff]   ;;  %v4337_v57 = vld [vmem:[#allocation12 + $0x28c] ss:$12 sps:$4 sm:$0xff]  }
 0x1f5   :  { %v2224_v40 = vpop.f32.mrf.mxu0  ;;  %v4331_v49 = vld [vmem:[#allocation12 + $0x2a4] ss:$12 sps:$4 sm:$0xff]  }
 0x1f6   :  { %v4715_v10 = vadd.f32 %v2263_v39, %v2223_v7  ;;  %v2265_v43 = vpop.f32.mrf.mxu1 }
 0x1f7   :  { %v2225_v44 = vpop.f32.mrf.mxu0  ;;  %3236 = vmatpush1.bf16.msra.mxu0 %v4266_v59  ;;  %3277 = vmatpush1.bf16.msra.mxu1 %v4269_v51  ;;  %v4326_v43 = vld [vmem:[#allocation12 + $0x120] ss:$12 sps:$4 sm:$0xff]   ;;  %v4332_v51 = vld [vmem:[#allocation12 + $0x108] ss:$12 sps:$4 sm:$0xff]  }
 0x1f8   :  { %v2266_v46 = vpop.f32.mrf.mxu1  ;;  %3237 = vmatprep.subr.bf16.mxu0 %v4274_v61  ;;  %3278 = vmatprep.subr.bf16.mxu1 %v4277_v62  ;;  %v4329_v44 = vld [vmem:[#allocation12 + $0x2a0] ss:$12 sps:$4 sm:$0xff]  }
 0x1fb   :  { %3238 = vmatpush1.bf16.msra.mxu0 %v4272_v63  ;;  %3279 = vmatpush1.bf16.msra.mxu1 %v4275_v0  ;;  %v4340_v0 = vld [vmem:[#allocation12 + $0xf4] ss:$12 sps:$4 sm:$0xff]  }
 0x1fc   :  { %3239 = vmatprep.subr.bf16.mxu0 %v4280_v1  ;;  %3280 = vmatprep.subr.bf16.mxu1 %v4283_v52  ;;  %v4343_v1 = vld [vmem:[#allocation12 + $0x274] ss:$12 sps:$4 sm:$0xff]   ;;  %v4338_v52 = vld [vmem:[#allocation12 + $0xf0] ss:$12 sps:$4 sm:$0xff]  }
 0x1ff   :  { %3240 = vmatpush1.bf16.msra.mxu0 %v4278_v2  ;;  %3281 = vmatpush1.bf16.msra.mxu1 %v4281_v3  ;;  %v4341_v2 = vld [vmem:[#allocation12 + $0x270] ss:$12 sps:$4 sm:$0xff]  }
 0x200   :  { %3241 = vmatprep.subr.bf16.mxu0 %v4286_v4  ;;  %3282 = vmatprep.subr.bf16.mxu1 %v4289_v5  ;;  %v4346_v3 = vld [vmem:[#allocation12 + $0xdc] ss:$12 sps:$4 sm:$0xff]   ;;  %v4344_v4 = vld [vmem:[#allocation12 + $0xd8] ss:$12 sps:$4 sm:$0xff]  }
 0x201   :  { %v4349_v5 = vld [vmem:[#allocation12 + $0x25c] ss:$12 sps:$4 sm:$0xff]  }
 0x203   :  { %3242 = vmatpush1.bf16.msra.mxu0 %v4284_v6  ;;  %3283 = vmatpush1.bf16.msra.mxu1 %v4287_v8  ;;  %v4347_v6 = vld [vmem:[#allocation12 + $0x258] ss:$12 sps:$4 sm:$0xff]  }
 0x204   :  { %3243 = vmatprep.subr.bf16.mxu0 %v4292_v9  ;;  %3284 = vmatprep.subr.bf16.mxu1 %v4295_v11  ;;  %v4352_v8 = vld [vmem:[#allocation12 + $0xc4] ss:$12 sps:$4 sm:$0xff]   ;;  %v4350_v11 = vld [vmem:[#allocation12 + $0xc0] ss:$12 sps:$4 sm:$0xff]  }
 0x205   :  { %v4355_v9 = vld [vmem:[#allocation12 + $0x244] ss:$12 sps:$4 sm:$0xff]  }
 0x207   :  { %3244 = vmatpush1.bf16.msra.mxu0 %v4290_v12  ;;  %3285 = vmatpush1.bf16.msra.mxu1 %v4293_v13  ;;  %v4353_v12 = vld [vmem:[#allocation12 + $0x240] ss:$12 sps:$4 sm:$0xff]   ;;  %v4356_v13 = vld [vmem:[#allocation12 + $0x170] ss:$12 sps:$4 sm:$0xff]  }
 0x208   :  { %3245 = vmatprep.subr.bf16.mxu0 %v4298_v14  ;;  %3286 = vmatprep.subr.bf16.mxu1 %v4301_v15  ;;  %v4357_v14 = vld [vmem:[#allocation12 + $0x2f0] ss:$12 sps:$4 sm:$0xff]  }
 0x20b   :  { %3246 = vmatpush1.bf16.msra.mxu0 %v4296_v16  ;;  %3287 = vmatpush1.bf16.msra.mxu1 %v4299_v17 }
 0x20c   :  { %3247 = vmatprep.subr.bf16.mxu0 %v4304_v18  ;;  %3288 = vmatprep.subr.bf16.mxu1 %v4307_v20 }
 0x20f   :  { %3248 = vmatpush1.bf16.msra.mxu0 %v4302_v22  ;;  %3289 = vmatpush1.bf16.msra.mxu1 %v4305_v23 }
 0x210   :  { %3249 = vmatprep.subr.bf16.mxu0 %v4310_v42  ;;  %3290 = vmatprep.subr.bf16.mxu1 %v4313_v54  ;;  %v897_v54 = vrot.slane %v4705_v45, %v4646_v56 }
 0x213   :  { %3250 = vmatpush2.bf16.msra.mxu0 %v4308_v24  ;;  %3291 = vmatpush2.bf16.msra.mxu1 %v4311_v25  ;;  %v901_v24 = vrot.slane %v4705_v45, %v562_v60 }
 0x214   :  { %3251 = vmatprep.subr.bf16.mxu0 %v4316_v26  ;;  %3292 = vmatprep.subr.bf16.mxu1 %v4319_v27 }
 0x217   :  { %3252 = vmatpush2.bf16.msra.mxu0 %v4314_v28  ;;  %3293 = vmatpush2.bf16.msra.mxu1 %v4317_v29  ;;  %v4557_v28 = vmov 1983009808  }
 0x218   :  { %3253 = vmatprep.subr.bf16.mxu0 %v4322_v30  ;;  %3294 = vmatprep.subr.bf16.mxu1 %v4325_v38  ;;  %v2533_v29 = vunpack.c.l.s4 %v4557_v28  ;;  %v4385_v28 = vld [vmem:[#allocation12 + $0x248] ss:$12 sps:$4 sm:$0xff]  }
 0x21b   :  { %3254 = vmatpush2.bf16.msra.mxu0 %v4320_v31  ;;  %3295 = vmatpush2.bf16.msra.mxu1 %v4323_v32 }
 0x21c   :  { %3255 = vmatprep.subr.bf16.mxu0 %v4328_v36  ;;  %3296 = vmatprep.subr.bf16.mxu1 %v4331_v49  ;;  %v2534_v36 = vunpack.c.0.s8 %v2533_v29  ;;  %v4386_v29 = vld [vmem:[#allocation12 + $0x8] ss:$12 sps:$4 sm:$0xff]  }
 0x21f   :  { %3256 = vmatpush2.bf16.msra.mxu0 %v4326_v43  ;;  %3297 = vmatpush2.bf16.msra.mxu1 %v4329_v44  ;;  %v4731_v44 = vsub.s32 %v2534_v36, %v4638_v48 }
 0x220   :  { %3257 = vmatprep.subr.bf16.mxu0 %v4334_v19  ;;  %3298 = vmatprep.subr.bf16.mxu1 %v4337_v57 }
 0x223   :  { %3258 = vmatpush2.bf16.msra.mxu0 %v4332_v51 }
 0x224   :  { %3259 = vmatprep.subr.bf16.mxu0 %v4340_v0 }
 0x227   :  { %3260 = vmatpush2.bf16.msra.mxu0 %v4338_v52  ;;  %v4359_v52 = vld [vmem:[#allocation12 + $0x230] ss:$12 sps:$4 sm:$0xff]  }
 0x228   :  { %3261 = vmatprep.subr.bf16.mxu0 %v4346_v3 }
 0x22b   :  { %3262 = vmatpush2.bf16.msra.mxu0 %v4344_v4  ;;  %v4363_v4 = vld [vmem:[#allocation12 + $0x218] ss:$12 sps:$4 sm:$0xff]  }
 0x22c   :  { %3263 = vmatprep.subr.bf16.mxu0 %v4352_v8  ;;  %v4366_v8 = vld [vmem:[#allocation12 + $0x80] ss:$12 sps:$4 sm:$0xff]  }
 0x22f   :  { %3264 = vmatpush2.bf16.msra.mxu0 %v4350_v11  ;;  %v4368_v11 = vld [vmem:[#allocation12 + $0x128] ss:$12 sps:$4 sm:$0xff]  }
 0x230   :  { %3817 = vmatprep.subr.bf16.mxu0 %v4356_v13  ;;  %v4370_v13 = vld [vmem:[#allocation12 + $0x68] ss:$12 sps:$4 sm:$0xff]  }
 0x231   :  { %v2302_v33 = vpop.f32.mrf.mxu0 }
 0x232   :  { %v2303_v34 = vadd.f32 %v2302_v33, %v4713_v37  ;;  %v2343_v35 = vpop.f32.mrf.mxu1 }
 0x233   :  { %v2304_v41 = vpop.f32.mrf.mxu0 }
 0x234   :  { %v2344_v7 = vadd.f32 %v2343_v35, %v2303_v34  ;;  %v2305_v39 = vadd.f32 %v2304_v41, %v4715_v10  ;;  %v2345_v40 = vpop.f32.mrf.mxu1  ;;  %v4335_v10 = vld [vmem:[#allocation12 + $0x288] ss:$12 sps:$4 sm:$0xff]  }
 0x235   :  { %v2306_v46 = vpop.f32.mrf.mxu0  ;;  %3299 = vmatpush2.bf16.msra.mxu1 %v4335_v10 }
 0x236   :  { %v2518_v47 = vmul.f32 0.01, %v2344_v7  ;;  %v2346_v50 = vadd.f32 %v2345_v40, %v2305_v39  ;;  %v2347_v55 = vpop.f32.mrf.mxu1  ;;  %vm2514_vm9 = vcmp.gt.f32.partialorder %v2344_v7, 0.0  ;;  %3300 = vmatprep.subr.bf16.mxu1 %v4343_v1  ;;  %v4358_v1 = vld [vmem:[#allocation12 + $0xb0] ss:$12 sps:$4 sm:$0xff]  }
 0x237   :  { %v2307_v37 = vpop.f32.mrf.mxu0 }
 0x238   :  { %vm2515_vm10 = vcmp.gt.f32.partialorder %v2346_v50, 0.0  ;;  %v2519_v21 = vmul.f32 0.01, %v2346_v50  ;;  %v2348_v59 = vpop.f32.mrf.mxu1  ;;  %v4719_v61 = vsel %vm2514_vm9, %v2344_v7, %v2518_v47 }
 0x239   :  { %3301 = vmatpush2.bf16.msra.mxu1 %v4341_v2 }
 0x23a   :  { %v4721_v62 = vsel %vm2515_vm10, %v2346_v50, %v2519_v21  ;;  %3302 = vmatprep.subr.bf16.mxu1 %v4349_v5  ;;  %v4364_v5 = vld [vmem:[#allocation12 + $0x140] ss:$12 sps:$4 sm:$0xff]  }
 0x23b   :  { %v2530_v63 = vcombine.low %v4719_v61, %v4721_v62  ;;  %v4360_v61 = vld [vmem:[#allocation12 + $0x158] ss:$12 sps:$4 sm:$0xff]  }
 0x23c   :  { %v4361_v62 = vld [vmem:[#allocation12 + $0x2d8] ss:$12 sps:$4 sm:$0xff]  }
 0x23d   :  { %3303 = vmatpush2.bf16.msra.mxu1 %v4347_v6  ;;  %v2538_v55 = vrot.slane %v2530_v63, %v4731_v44  ;;  %v4362_v63 = vld [vmem:[#allocation12 + $0x98] ss:$12 sps:$4 sm:$0xff]   ;;  %v4365_v6 = vld [vmem:[#allocation12 + $0x2c0] ss:$12 sps:$4 sm:$0xff]  }
 0x23e   :  { %3304 = vmatprep.subr.bf16.mxu1 %v4355_v9  ;;  %v4367_v9 = vld [vmem:[#allocation12 + $0x200] ss:$12 sps:$4 sm:$0xff]  }
 0x241   :  { %3305 = vmatpush2.bf16.msra.mxu1 %v4353_v12  ;;  %v4369_v12 = vld [vmem:[#allocation12 + $0x2a8] ss:$12 sps:$4 sm:$0xff]  }
 0x242   :  { %3839 = vmatprep.subr.bf16.mxu1 %v4357_v14  ;;  %v4371_v14 = vld [vmem:[#allocation12 + $0x1e8] ss:$12 sps:$4 sm:$0xff]  }
 0x271   :  { %v2384_v15 = vpop.f32.mrf.mxu0 }
 0x272   :  { %v2425_v16 = vpop.f32.mrf.mxu1  ;;  %v2385_v25 = vadd.f32 %v2384_v15, %v897_v54  ;;  %v4372_v15 = vld [vmem:[#allocation12 + $0x110] ss:$12 sps:$4 sm:$0xff]   ;;  %v4380_v54 = vld [vmem:[#allocation12 + $0xe0] ss:$12 sps:$4 sm:$0xff]  }
 0x273   :  { %v2386_v17 = vpop.f32.mrf.mxu0 }
 0x274   :  { %v2427_v18 = vpop.f32.mrf.mxu1  ;;  %v2387_v26 = vadd.f32 %v2386_v17, %v901_v24  ;;  %v2426_v27 = vadd.f32 %v2425_v16, %v2385_v25  ;;  %v4373_v16 = vld [vmem:[#allocation12 + $0x290] ss:$12 sps:$4 sm:$0xff]   ;;  %v4381_v24 = vld [vmem:[#allocation12 + $0x260] ss:$12 sps:$4 sm:$0xff]  }
 0x275   :  { %v2388_v20 = vpop.f32.mrf.mxu0  ;;  %v4374_v17 = vld [vmem:[#allocation12 + $0x50] ss:$12 sps:$4 sm:$0xff]   ;;  %v4382_v25 = vld [vmem:[#allocation12 + $0x20] ss:$12 sps:$4 sm:$0xff]  }
 0x276   :  { %v2429_v22 = vpop.f32.mrf.mxu1  ;;  %v2428_v38 = vadd.f32 %v2427_v18, %v2387_v26  ;;  %v4375_v18 = vld [vmem:[#allocation12 + $0x1d0] ss:$12 sps:$4 sm:$0xff]   ;;  %v4376_v20 = vld [vmem:[#allocation12 + $0xf8] ss:$12 sps:$4 sm:$0xff]   ;;  %v4383_v26 = vld [vmem:[#allocation12 + $0x1a0] ss:$12 sps:$4 sm:$0xff]  }
 0x277   :  { %v2389_v23 = vpop.f32.mrf.mxu0  ;;  %v4377_v22 = vld [vmem:[#allocation12 + $0x278] ss:$12 sps:$4 sm:$0xff]  }
 0x278   :  { %v2430_v42 = vpop.f32.mrf.mxu1  ;;  %v4378_v23 = vld [vmem:[#allocation12 + $0x38] ss:$12 sps:$4 sm:$0xff]  }
 0x279   :  { %v4379_v42 = vld [vmem:[#allocation12 + $0x1b8] ss:$12 sps:$4 sm:$0xff]  }
 0x2b1   :  { %v2466_v30 = vpop.f32.mrf.mxu0 }
 0x2b2   :  { %v2467_v31 = vadd.f32 %v2466_v30, %v2426_v27  ;;  %v2507_v32 = vpop.f32.mrf.mxu1  ;;  %v4384_v27 = vld [vmem:[#allocation12 + $0xc8] ss:$12 sps:$4 sm:$0xff]  }
 0x2b3   :  { %v2468_v33 = vpop.f32.mrf.mxu0  ;;  %v4387_v30 = vld [vmem:[#allocation12 + $0x188] ss:$12 sps:$4 sm:$0xff]  }
 0x2b4   :  { %v2508_v34 = vadd.f32 %v2507_v32, %v2467_v31  ;;  %v2469_v35 = vadd.f32 %v2468_v33, %v2428_v38  ;;  %v2509_v41 = vpop.f32.mrf.mxu1 }
 0x2b5   :  { %v2470_v49 = vpop.f32.mrf.mxu0 }
 0x2b6   :  { %v2520_v7 = vmul.f32 0.01, %v2508_v34  ;;  %v2510_v39 = vadd.f32 %v2509_v41, %v2469_v35  ;;  %v2511_v40 = vpop.f32.mrf.mxu1  ;;  %vm2516_vm11 = vcmp.gt.f32.partialorder %v2508_v34, 0.0  ;;  %v2704_v49 = vld [vmem:[%s4766_s7] sm:$0x7]  ;;  %s4558_s7 = smov [#allocation14]  }
 0x2b7   :  { %v2471_v60 = vpop.f32.mrf.mxu0  ;;  %s3428_s16 = sshll.u32 %s4558_s7, 4  ;;  %s3429_s16 = int_to_ptr.vmem [resolvable:$true] %s3428_s16 }
 0x2b8   :  { %vm2517_vm12 = vcmp.gt.f32.partialorder %v2510_v39, 0.0  ;;  %v2521_v45 = vmul.f32 0.01, %v2510_v39  ;;  %v2512_v43 = vpop.f32.mrf.mxu1  ;;  %v2524_v46 = vsel %vm2516_vm11, %v2508_v34, %v2520_v7  ;;  %v2713_v7 = vrot.slane %v2704_v49, %v4649_v58  ;;  %s4514_s17 = scalar_lea.vmem %s3429_s16, 96  ;;  %p4519_p3 = scmp.lt.s32.totalorder %s3429_s16, %s3429_s16 }
 0x2b9   :  { %p4515_p2 = scmp.ne.s32.totalorder %s3429_s16, %s4514_s17  ;;  %p4520_p4 = scmp.lt.s32.totalorder %s4514_s17, %s4514_s17 }
 0x2ba   :  { %v2525_v47 = vsel %vm2517_vm12, %v2510_v39, %v2521_v45  ;;  %v2709_v39 = vrot.slane %v2704_v49, %v4643_v53 }
 0x2bb   :  { %v2531_v50 = vcombine.low %v2524_v46, %v2525_v47  ;;  %p4521_p5 = por %p4520_p4, %p4519_p3 }
 0x2bd   :  { %v2545_v37 = vrot.slane %v2531_v50, %v4731_v44  ;;  %v2717_v50 = vrot.slane %v2704_v49, %v4646_v56  ;;  %p4522_p6 = pnand %p4521_p5, %p4515_p2 }
 0x2bf   :  { %v2546_v19 = vcombine.low %v2538_v55, %v2545_v37  ;;  %v3816_v57 = vcombine.low %v2545_v37, %v2545_v37 }
 0x2c1   :  { %v2558_v21 = vrot.slane %v2546_v19, %v4731_v44  ;;  %v2565_v59 = vrot.slane %v3816_v57, %v4731_v44 }
 0x2c3   :  { %v2566_v51 = vcombine.high %v2558_v21, %v2558_v21  ;;  %v2567_v10 = vcombine.high %v2565_v59, %v2565_v59  ;;  %v4740_v2 = vpack.c.bf16 %v2558_v21, %v2558_v21  ;;  %v4742_v3 = vpack.c.bf16 %v2565_v59, %v2565_v59 }
 0x2c5   :  { %v2573_v48 = vpack.c.bf16 %v2566_v51, %v2566_v51  ;;  %v2575_v0 = vpack.c.bf16 %v2567_v10, %v2567_v10 }
 0x2c7   :  { %3265 = vmatprep.mubr.bf16.mxu0 %v2573_v48  ;;  %3306 = vmatprep.mubr.bf16.mxu1 %v2575_v0 }
 0x2c8   :  { %3266 = vmatmul.mubr.bf16.vlgmr.msra.gmra.mxu0 %v4740_v2  ;;  %3307 = vmatmul.mubr.bf16.vlgmr.msra.gmra.mxu1 %v4742_v3 }
 0x2c9   :  { %3818 = vmatpush3.bf16.msra.mxu0 %v4358_v1  ;;  %3840 = vmatpush3.bf16.msra.mxu1 %v4359_v52 }
 0x2ca   :  { %3347 = vmatprep.mubr.bf16.mxu0 %v2573_v48  ;;  %3387 = vmatprep.mubr.bf16.mxu1 %v2575_v0 }
 0x2cb   :  { %3819 = vmatprep.subr.bf16.mxu0 %v4360_v61  ;;  %3841 = vmatprep.subr.bf16.mxu1 %v4361_v62 }
 0x2cd   :  { %3820 = vmatpush3.bf16.msra.mxu0 %v4362_v63  ;;  %3842 = vmatpush3.bf16.msra.mxu1 %v4363_v4 }
 0x2ce   :  { %3821 = vmatprep.subr.bf16.mxu0 %v4364_v5  ;;  %3843 = vmatprep.subr.bf16.mxu1 %v4365_v6 }
 0x2d1   :  { %3822 = vmatpush3.bf16.msra.mxu0 %v4366_v8  ;;  %3844 = vmatpush3.bf16.msra.mxu1 %v4367_v9 }
 0x2d2   :  { %3823 = vmatprep.subr.bf16.mxu0 %v4368_v11  ;;  %3845 = vmatprep.subr.bf16.mxu1 %v4369_v12 }
 0x2d5   :  { %3824 = vmatpush3.bf16.msra.mxu0 %v4370_v13  ;;  %3846 = vmatpush3.bf16.msra.mxu1 %v4371_v14 }
 0x2d6   :  { %3825 = vmatprep.subr.bf16.mxu0 %v4372_v15  ;;  %3847 = vmatprep.subr.bf16.mxu1 %v4373_v16 }
 0x2d9   :  { %3826 = vmatpush3.bf16.msra.mxu0 %v4374_v17  ;;  %3848 = vmatpush3.bf16.msra.mxu1 %v4375_v18 }
 0x2da   :  { %3827 = vmatprep.subr.bf16.mxu0 %v4376_v20  ;;  %3849 = vmatprep.subr.bf16.mxu1 %v4377_v22 }
 0x2dd   :  { %3828 = vmatpush3.bf16.msra.mxu0 %v4378_v23  ;;  %3850 = vmatpush3.bf16.msra.mxu1 %v4379_v42 }
 0x2de   :  { %3829 = vmatprep.subr.bf16.mxu0 %v4380_v54  ;;  %3851 = vmatprep.subr.bf16.mxu1 %v4381_v24 }
 0x2e1   :  { %3830 = vmatpush3.bf16.msra.mxu0 %v4382_v25  ;;  %3852 = vmatpush3.bf16.msra.mxu1 %v4383_v26 }
 0x2e2   :  { %3831 = vmatprep.subr.bf16.mxu0 %v4384_v27  ;;  %3853 = vmatprep.subr.bf16.mxu1 %v4385_v28 }
 0x2e5   :  { %3832 = vmatpush3.bf16.msra.mxu0 %v4386_v29  ;;  %3854 = vmatpush3.bf16.msra.mxu1 %v4387_v30 }
 0x2e8   :  { %3348 = vmatmul.mubr.bf16.vlgmr.msra.gmra.mxu0 %v4740_v2  ;;  %3388 = vmatmul.mubr.bf16.vlgmr.msra.gmra.mxu1 %v4742_v3 }
 0x388   :  { %v3267_v38 = vpop.f32.mrf.mxu0  ;;  %v3308_v31 = vpop.f32.mrf.mxu1 }
 0x389   :  { %v3268_v60 = vadd.f32 %v3267_v38, %v2709_v39 }
 0x38a   :  { %v3269_v32 = vpop.f32.mrf.mxu0  ;;  %v3310_v33 = vpop.f32.mrf.mxu1 }
 0x38b   :  { %v3270_v40 = vadd.f32 %v3269_v32, %v2713_v7  ;;  %v3309_v43 = vadd.f32 %v3308_v31, %v3268_v60 }
 0x38c   :  { %v3271_v34 = vpop.f32.mrf.mxu0  ;;  %v3312_v35 = vpop.f32.mrf.mxu1 }
 0x38d   :  { %v3311_v45 = vadd.f32 %v3310_v33, %v3270_v40 }
 0x38e   :  { %v3272_v41 = vpop.f32.mrf.mxu0  ;;  %v3313_v36 = vpop.f32.mrf.mxu1 }
 0x38f   :  { %4388 = vtanh.f32 %v3311_v45 }
 0x390   :  { %4390 = vtanh.f32 %v3309_v43 }
 0x39c   :  { %v4389_v48 = vpop.eup %4388 }
 0x39d   :  { %v4391_v0 = vpop.eup %4390  ;;  %v3399_v1 = vmul.f32 0.1, %v4389_v48 }
 0x39e   :  { %v3398_v52 = vmul.f32 0.1, %v4391_v0 }
 0x3a0   :  { %v3404_v2 = vcombine.low %v3398_v52, %v3399_v1 }
 0x3a2   :  { %v3411_v56 = vrot.slane %v3404_v2, %v4731_v44 }
 0x3a8   :  { %v3833_v46 = vpop.f32.mrf.mxu0  ;;  %v3855_v47 = vpop.f32.mrf.mxu1 }
 0x3aa   :  { %v3834_v55 = vpop.f32.mrf.mxu0  ;;  %v3856_v37 = vpop.f32.mrf.mxu1 }
 0x3ab   :  { %v3835_v19 = vadd.f32 %v3834_v55, %v3833_v46  ;;  %v3857_v51 = vadd.f32 %v3856_v37, %v3855_v47 }
 0x3ac   :  { %v3836_v57 = vpop.f32.mrf.mxu0  ;;  %v3858_v21 = vpop.f32.mrf.mxu1 }
 0x3ad   :  { %v3350_v59 = vadd.f32 %v3835_v19, %v2717_v50 }
 0x3ae   :  { %v3837_v58 = vpop.f32.mrf.mxu0  ;;  %v3859_v10 = vpop.f32.mrf.mxu1 }
 0x3af   :  { %v3390_v53 = vadd.f32 %v3857_v51, %v3350_v59 }
 0x3b1   :  { %4392 = vtanh.f32 %v3390_v53 }
 0x3be   :  { %v4393_v3 = vpop.eup %4392 }
 0x3bf   :  { %v3400_v61 = vmul.f32 0.1, %v4393_v3 }
 0x3c1   :  { %v3418_v62 = vrot.slane %v3400_v61, %v4731_v44 }
 0x3c3   :  { %v3419_v63 = vcombine.low %v3411_v56, %v3418_v62 }
 0x3c5   :  { %3421 = vst [vmem:[#allocation14] sm:$0x3f] %v3419_v63 }
 0x3c6   :  { %4525 = shalt.err (!%p4522_p6)
}
 0x3c7   :  { %3431 = dma.vmem_to_hbm [thread:$0]  %s3429_s16, 96, %s4767_s8, [#allocation5]  }
 0x3c8   :  { %4542 = dma.done.wait [#allocation5], 96  }
 0x3c9   :  { %4543 = vsyncadd [#allocation5], 4294967200 }
 0x3ca   :  { %3435 = vsyncpa [#allocation4], 1 }
 0x3cb   :  { %3436 = vsyncpa [#allocation7], 1 }
 0x3cc   :  { %3437 = vsyncpa [#allocation10], 1 }
 0x3cd   :  { %3438 = vsyncpa [#allocation13], 1 }
 0x3ce   :  { %3439 = vsyncpa [#allocation5], 1 }

</bundles_post_ra>
